<compile_context>
chip_gen: v7x
topology: tpu7x:2x2x1
jax: 0.10.0
libtpu: 0.0.40
codegen_flags: <defaults>
</compile_context>

<pallas_src>
import re

import jax
import jax.numpy as jnp
from jax import lax
from jax.experimental import pallas as pl
from jax.experimental.pallas import tpu as pltpu


def _round_up(n: int, m: int) -> int:
    return ((n + m - 1) // m) * m


def _tpu_generation() -> int:
    """Best-effort TPU generation (4, 5, 6, 7, ...) from the device kind string."""
    try:
        kind = jax.devices()[0].device_kind
    except Exception:
        return 6
    m = re.search(r"(\d+)", kind)
    return int(m.group(1)) if m else 6


def _pick_time_chunk(T: int, tc_max: int) -> int:
    """Largest divisor of T that is <= tc_max and a multiple of 8 (or equal to T)."""
    tc_max = max(1, min(T, tc_max))
    for cand in range(tc_max, 0, -1):
        if T % cand == 0 and (cand % 8 == 0 or cand == T):
            return cand
    return 8 if T % 8 == 0 else T


def lstm_chunk_kernel(x_ref, wih_ref, whh_ref, b_ref, out_ref, pre_sc, h_sc, c_sc):
    """One (batch-block, time-chunk) grid step of the LSTM recurrence.

    x_ref   : (Bb, Tc, D)     current input chunk, incoming dtype
    wih_ref : (D,  4*Hp)      W_ih^T, gate order [i,f,o,g], each gate padded to Hp (MXU dtype)
    whh_ref : (Hp, 4*Hp)      W_hh^T, gate- and row-padded (MXU dtype)
    b_ref   : (1,  4*Hp)      fused bias b_ih + b_hh, gate-padded, f32
    out_ref : (Bb, Hp)        final hidden state h_T (written on the last time chunk)
    pre_sc  : (Tc, Bb, 4*Hp)  VMEM scratch: input projection for this chunk, TIME-MAJOR
    h_sc,c_sc:(Bb, Hp)        VMEM scratch: recurrent state carried across time chunks
    """
    Bb, Tc, D = x_ref.shape
    Hp = h_sc.shape[1]
    G = 4 * Hp
    Gs = 3 * Hp                      # contiguous sigmoid gates [i, f, o]
    cdt = whh_ref.dtype              # MXU input dtype (f32, or bf16 on v6e/v7x)
    t_blk = pl.program_id(1)

    @pl.when(t_blk == 0)
    def _init():
        h_sc[...] = jnp.zeros_like(h_sc)
        c_sc[...] = jnp.zeros_like(c_sc)

    # ---- Phase 1: input projection, hoisted off the serial chain -----------------------
    # Written time-major so each recurrence step reads a tile-aligned (Bb, *) slab.
    # The per-t iterations are independent (ILP-friendly); static t -> static slices.
    wih = wih_ref[...]                                     # (D, G), resident weights
    bias = jnp.broadcast_to(b_ref[...], (Bb, G))           # broadcast hoisted out of the loop
    for t in range(Tc):
        x_t = x_ref[:, t, :].astype(cdt)                   # (Bb, D)
        pre_sc[t] = jnp.dot(x_t, wih, preferred_element_type=jnp.float32) + bias

    # ---- Phase 2: serial recurrence (latency-bound h->h chain) -------------------------
    # W_hh slices hoisted out of the loop (stay VMEM-resident across steps).
    # Further optimization (not required): pin whh via pltpu.matmul_push_rhs and
    # software-pipeline two independent batch half-blocks per step.
    whh_s = whh_ref[:, :Gs]                                # (Hp, 3*Hp) -> i,f,o
    whh_g = whh_ref[:, Gs:]                                # (Hp, Hp)   -> g

    def step(t, carry):
        h, c = carry                                       # f32 state
        hc = h.astype(cdt)
        sig_pre = pre_sc[t, :, :Gs] + jnp.dot(
            hc, whh_s, preferred_element_type=jnp.float32)         # (Bb, 3*Hp)
        sig = 0.5 * (jnp.tanh(0.5 * sig_pre) + 1.0)        # sigmoid(i,f,o) via one EUP tanh
        i_g = sig[:, 0 * Hp:1 * Hp]
        f_g = sig[:, 1 * Hp:2 * Hp]
        o_g = sig[:, 2 * Hp:3 * Hp]
        g_g = jnp.tanh(pre_sc[t, :, Gs:] + jnp.dot(
            hc, whh_g, preferred_element_type=jnp.float32))        # (Bb, Hp)
        c_n = f_g * c + i_g * g_g
        h_n = o_g * jnp.tanh(c_n)
        return (h_n, c_n)

    h, c = lax.fori_loop(0, Tc, step, (h_sc[...], c_sc[...]), unroll=min(8, Tc))

    # Persist state for the next time chunk (once per chunk, not per step).
    h_sc[...] = h
    c_sc[...] = c

    @pl.when(t_blk == pl.num_programs(1) - 1)
    def _finalize():
        out_ref[...] = h.astype(out_ref.dtype)             # lane-dense (Bb, Hp) store


def context_encoder_forward(x_btd, w_ih, w_hh, b_ih, b_hh, *, time_chunk=None,
                            mxu_dtype=None):
    """ContextEncoder.forward: x (B, T, D) -> (B, H) final LSTM hidden state.

    Weights are in PyTorch nn.LSTM layout: w_ih (4H, D), w_hh (4H, H), biases (4H,),
    gate order [i, f, g, o].  mxu_dtype=None -> bf16 MXU inputs on v6e/v7x, f32 otherwise.
    """
    B, T, D = x_btd.shape
    H = w_hh.shape[1]
    assert w_ih.shape == (4 * H, D) and w_hh.shape == (4 * H, H)
    f32 = jnp.float32

    gen = _tpu_generation()
    if mxu_dtype is None:
        mxu_dtype = jnp.bfloat16 if gen >= 6 else f32
    cdt = jnp.dtype(mxu_dtype)

    Hp = _round_up(H, 128)            # lane-aligned per-gate width
    G = 4 * Hp

    # ---- Batch block: cap at 64 (vreg pressure); split for v7x megacore ---------------
    BB_CAP = 64
    if B <= BB_CAP:
        if gen >= 7 and B >= 16:
            Bb = _round_up((B + 1) // 2, 8)   # two blocks -> both TensorCores busy
        else:
            Bb = B                            # single block; no batch padding needed
    else:
        Bb = BB_CAP
    Bp = _round_up(B, Bb)

    # ---- VMEM budget -> time chunk ------------------------------------------------------
    if gen >= 7:
        vmem_limit, budget = 48 * 2**20, 36 * 2**20      # 64 MiB physical VMEM per TC
    elif gen >= 4:
        vmem_limit, budget = 64 * 2**20, 52 * 2**20      # 128 MiB physical VMEM
    else:
        vmem_limit, budget = 12 * 2**20, 8 * 2**20
    x_isz = jnp.dtype(x_btd.dtype).itemsize
    c_isz = cdt.itemsize
    fixed = (2 * D * G * c_isz           # W_ih^T (double-buffered)
             + 2 * Hp * G * c_isz        # W_hh^T
             + 2 * G * 4                 # bias
             + 2 * Bb * Hp * 4           # output block
             + 2 * Bb * Hp * 4           # h/c state scratch
             + Hp * G * c_isz            # hoisted W_hh slice temporaries
             + 4 * 2**20)                # compiler headroom
    per_t = Bb * (2 * D * x_isz + G * 4)  # double-buffered x rows + pre-gate scratch
    tc_max = max(1, (budget - fixed) // per_t)
    if time_chunk is None:
        Tc = _pick_time_chunk(T, min(tc_max, 64))
    else:
        Tc = int(time_chunk)
        assert T % Tc == 0, "time_chunk must divide seq_len"
        assert Tc % 8 == 0 or Tc == T, "time_chunk must be a multiple of 8 (or == seq_len)"

    # ---- Weight packing: transpose, reorder gates [i,f,g,o]->[i,f,o,g], pad to Hp ------
    # Zero-padding is exact: padded gate pre-activations are 0 -> g_pad=0, c_pad/h_pad stay
    # 0 (c starts at 0), and padded W_hh rows are 0 so they never touch real columns.
    def _pack_gate_cols(w_rows):
        blocks = jnp.split(w_rows.astype(f32), 4, axis=0)        # 4 x (H, C), torch order
        cols = []
        for gi in (0, 1, 3, 2):                                  # -> [i, f, o, g]
            blk = jnp.transpose(blocks[gi])                      # (C, H)
            cols.append(jnp.pad(blk, ((0, 0), (0, Hp - H))))
        return jnp.concatenate(cols, axis=1)                     # (C, 4*Hp)

    wih_p = _pack_gate_cols(w_ih).astype(cdt)                                      # (D, G)
    whh_p = jnp.pad(_pack_gate_cols(w_hh), ((0, Hp - H), (0, 0))).astype(cdt)      # (Hp, G)
    b_p = _pack_gate_cols((b_ih + b_hh).reshape(4 * H, 1)).astype(f32)             # (1, G)

    # x: no dtype cast / full HBM copy in the wrapper; pad batch only when required.
    x_in = x_btd if Bp == B else jnp.pad(x_btd, ((0, Bp - B), (0, 0), (0, 0)))

    grid = (Bp // Bb, T // Tc)
    grid_spec = pltpu.PrefetchScalarGridSpec(
        num_scalar_prefetch=0,
        grid=grid,
        in_specs=[
            pl.BlockSpec((Bb, Tc, D), lambda b, t: (b, t, 0)),   # x: streamed over time
            pl.BlockSpec((D, G), lambda b, t: (0, 0)),           # W_ih^T (resident)
            pl.BlockSpec((Hp, G), lambda b, t: (0, 0)),          # W_hh^T (resident)
            pl.BlockSpec((1, G), lambda b, t: (0, 0)),           # fused bias
        ],
        out_specs=pl.BlockSpec((Bb, Hp), lambda b, t: (b, 0)),   # resident across time
        scratch_shapes=[
            pltpu.VMEM((Tc, Bb, G), f32),   # pre-gates, time-major
            pltpu.VMEM((Bb, Hp), f32),      # h state (carried across time chunks)
            pltpu.VMEM((Bb, Hp), f32),      # c state
        ],
    )
    out_p = pl.pallas_call(
        lstm_chunk_kernel,
        out_shape=jax.ShapeDtypeStruct((Bp, Hp), f32),
        grid_spec=grid_spec,
        compiler_params=pltpu.CompilerParams(
            dimension_semantics=("parallel", "arbitrary"),
            vmem_limit_bytes=vmem_limit,
        ),
    )(x_in, wih_p, whh_p, b_p)

    # hn.transpose(0,1).view(-1, H) with num_layers == 1  ==  final h, (B, H)
    return out_p[:B, :H]


def lstm_ref(x_btd, w_ih, w_hh, b_ih, b_hh):
    """Pure-JAX reference of torch.nn.LSTM (1 layer, batch_first); returns h_T."""
    H = w_hh.shape[1]
    b = b_ih + b_hh

    def step(carry, x_t):
        h, c = carry
        gates = x_t @ w_ih.T + h @ w_hh.T + b
        i = jax.nn.sigmoid(gates[:, 0 * H:1 * H])
        f = jax.nn.sigmoid(gates[:, 1 * H:2 * H])
        g = jnp.tanh(gates[:, 2 * H:3 * H])
        o = jax.nn.sigmoid(gates[:, 3 * H:4 * H])
        c_new = f * c + i * g
        h_new = o * jnp.tanh(c_new)
        return (h_new, c_new), None

    B = x_btd.shape[0]
    h0 = jnp.zeros((B, H), jnp.float32)
    c0 = jnp.zeros((B, H), jnp.float32)
    (hT, _), _ = lax.scan(step, (h0, c0), jnp.transpose(x_btd, (1, 0, 2)))
    return hT


if __name__ == "__main__":
    # Small shapes consistent with the module: batch=4, seq_len=16, input=16, hidden=32.
    B, T, D, H = 4, 16, 16, 32

    key = jax.random.PRNGKey(0)
    k1, k2, k3, k4, k5 = jax.random.split(key, 5)
    bound = 1.0 / (H ** 0.5)  # PyTorch LSTM default init: U(-1/sqrt(H), 1/sqrt(H))
    w_ih = jax.random.uniform(k1, (4 * H, D), minval=-bound, maxval=bound, dtype=jnp.float32)
    w_hh = jax.random.uniform(k2, (4 * H, H), minval=-bound, maxval=bound, dtype=jnp.float32)
    b_ih = jax.random.uniform(k3, (4 * H,), minval=-bound, maxval=bound, dtype=jnp.float32)
    b_hh = jax.random.uniform(k4, (4 * H,), minval=-bound, maxval=bound, dtype=jnp.float32)
    x = jax.random.normal(k5, (B, T, D), dtype=jnp.float32)

    ref = lstm_ref(x, w_ih, w_hh, b_ih, b_hh)

    # 1) f32-MXU path, time_chunk=8 -> 2-step time grid exercises the cross-chunk carry.
    out = context_encoder_forward(x, w_ih, w_hh, b_ih, b_hh,
                                  time_chunk=8, mxu_dtype=jnp.float32)
    out = jax.block_until_ready(out)
    assert out.shape == (B, H), out.shape
    max_err = float(jnp.max(jnp.abs(out - ref)))
    assert jnp.allclose(out, ref, atol=5e-5, rtol=5e-5), max_err

    # 2) Auto path (budget-driven Tc; bf16 MXU inputs on v6e/v7x, f32 elsewhere).
    out_auto = context_encoder_forward(x, w_ih, w_hh, b_ih, b_hh)
    out_auto = jax.block_until_ready(out_auto)
    assert out_auto.shape == (B, H), out_auto.shape
    assert bool(jnp.all(jnp.isfinite(out_auto)))
    auto_err = float(jnp.max(jnp.abs(out_auto - ref)))
    assert auto_err < 1e-1, auto_err  # loose: bf16 MXU inputs on v6e/v7x

    print("KERNEL_OK")
</pallas_src>

<mosaic_0001>
module attributes {stable_mosaic.version = 11 : i64} {
  func.func @lstm_chunk_kernel(%arg0: i32, %arg1: i32, %arg2: memref<4x8x16xf32, #tpu.memory_space<vmem>>, %arg3: memref<16x512xf32, #tpu.memory_space<vmem>>, %arg4: memref<128x512xf32, #tpu.memory_space<vmem>>, %arg5: memref<1x512xf32, #tpu.memory_space<vmem>>, %arg6: memref<4x128xf32, #tpu.memory_space<vmem>>, %arg7: memref<8x4x512xf32, #tpu.memory_space<vmem>>, %arg8: memref<4x128xf32, #tpu.memory_space<vmem>>, %arg9: memref<4x128xf32, #tpu.memory_space<vmem>>) attributes {dimension_semantics = [#tpu.dimension_semantics<parallel>, #tpu.dimension_semantics<arbitrary>], iteration_bounds = array<i64: 1, 2>, scalar_prefetch = 0 : i64, scratch_operands = 3 : i64, tpu.core_type = #tpu.core_type<tc>, window_params = [{transform_indices = @transform_0, window_bounds = array<i64: 4, 8, 16>}, {pipeline_mode = #tpu.pipeline_mode<synchronous>, transform_indices = @transform_1, window_bounds = array<i64: 16, 512>}, {pipeline_mode = #tpu.pipeline_mode<synchronous>, transform_indices = @transform_2, window_bounds = array<i64: 128, 512>}, {pipeline_mode = #tpu.pipeline_mode<synchronous>, transform_indices = @transform_3, window_bounds = array<i64: 1, 512>}, {transform_indices = @transform_4, window_bounds = array<i64: 4, 128>}]} {
    %c0_i32 = arith.constant 0 : i32
    %0 = arith.cmpi eq, %arg1, %c0_i32 : i32
    %1 = arith.extui %0 : i1 to i32
    %c0_i32_0 = arith.constant 0 : i32
    %2 = arith.cmpi ne, %1, %c0_i32_0 : i32
    scf.if %2 {
      %cst_138 = arith.constant 0.000000e+00 : f32
      %280 = vector.broadcast %cst_138 : f32 to vector<4x128xf32>
      %c0_139 = arith.constant 0 : index
      %c0_140 = arith.constant 0 : index
      %281 = vector.load %arg8[%c0_139, %c0_140] : memref<4x128xf32, #tpu.memory_space<vmem>>, vector<4x128xf32>
      tpu.vector_store %arg8[%c0_139, %c0_140], %280 {strides = array<i32>} : memref<4x128xf32, #tpu.memory_space<vmem>>, vector<4x128xf32>,
      %cst_141 = arith.constant 0.000000e+00 : f32
      %282 = vector.broadcast %cst_141 : f32 to vector<4x128xf32>
      %c0_142 = arith.constant 0 : index
      %c0_143 = arith.constant 0 : index
      %283 = vector.load %arg9[%c0_142, %c0_143] : memref<4x128xf32, #tpu.memory_space<vmem>>, vector<4x128xf32>
      tpu.vector_store %arg9[%c0_142, %c0_143], %282 {strides = array<i32>} : memref<4x128xf32, #tpu.memory_space<vmem>>, vector<4x128xf32>,
    } else {
    }
    %c0 = arith.constant 0 : index
    %c0_1 = arith.constant 0 : index
    %3 = vector.load %arg3[%c0, %c0_1] : memref<16x512xf32, #tpu.memory_space<vmem>>, vector<16x512xf32>
    %c0_2 = arith.constant 0 : index
    %c0_3 = arith.constant 0 : index
    %4 = vector.load %arg5[%c0_2, %c0_3] : memref<1x512xf32, #tpu.memory_space<vmem>>, vector<1x512xf32>
    %5 = vector.shape_cast %4 : vector<1x512xf32> to vector<1x512xf32>
    %6 = vector.broadcast %5 : vector<1x512xf32> to vector<4x512xf32>
    %c0_4 = arith.constant 0 : index
    %c0_5 = arith.constant 0 : index
    %c0_6 = arith.constant 0 : index
    %7 = vector.load %arg2[%c0_4, %c0_5, %c0_6] : memref<4x8x16xf32, #tpu.memory_space<vmem>>, vector<4x1x16xf32>
    %8 = vector.shape_cast %7 : vector<4x1x16xf32> to vector<4x16xf32>
    %cst = arith.constant dense<0.000000e+00> : vector<4x512xf32>
    %9 = tpu.matmul %8, %3, %cst {dimension_numbers = #tpu.dot_dimension_numbers<[1], [0], [0], [1], [0, 0, 1, 1], [], []>} : vector<4x16xf32>, vector<16x512xf32>, vector<4x512xf32> -> vector<4x512xf32>
    %10 = arith.addf %9, %6 : vector<4x512xf32>
    %c0_7 = arith.constant 0 : index
    %c0_8 = arith.constant 0 : index
    %c0_9 = arith.constant 0 : index
    %11 = vector.load %arg7[%c0_7, %c0_8, %c0_9] : memref<8x4x512xf32, #tpu.memory_space<vmem>>, vector<1x4x512xf32>
    %12 = vector.shape_cast %11 : vector<1x4x512xf32> to vector<4x512xf32>
    %13 = vector.shape_cast %10 : vector<4x512xf32> to vector<1x4x512xf32>
    tpu.vector_store %arg7[%c0_7, %c0_8, %c0_9], %13 {strides = array<i32>} : memref<8x4x512xf32, #tpu.memory_space<vmem>>, vector<1x4x512xf32>,
    %c0_10 = arith.constant 0 : index
    %c1 = arith.constant 1 : index
    %c0_11 = arith.constant 0 : index
    %14 = vector.load %arg2[%c0_10, %c1, %c0_11] : memref<4x8x16xf32, #tpu.memory_space<vmem>>, vector<4x1x16xf32>
    %15 = vector.shape_cast %14 : vector<4x1x16xf32> to vector<4x16xf32>
    %cst_12 = arith.constant dense<0.000000e+00> : vector<4x512xf32>
    %16 = tpu.matmul %15, %3, %cst_12 {dimension_numbers = #tpu.dot_dimension_numbers<[1], [0], [0], [1], [0, 0, 1, 1], [], []>} : vector<4x16xf32>, vector<16x512xf32>, vector<4x512xf32> -> vector<4x512xf32>
    %17 = arith.addf %16, %6 : vector<4x512xf32>
    %c1_13 = arith.constant 1 : index
    %c0_14 = arith.constant 0 : index
    %c0_15 = arith.constant 0 : index
    %18 = vector.load %arg7[%c1_13, %c0_14, %c0_15] : memref<8x4x512xf32, #tpu.memory_space<vmem>>, vector<1x4x512xf32>
    %19 = vector.shape_cast %18 : vector<1x4x512xf32> to vector<4x512xf32>
    %20 = vector.shape_cast %17 : vector<4x512xf32> to vector<1x4x512xf32>
    tpu.vector_store %arg7[%c1_13, %c0_14, %c0_15], %20 {strides = array<i32>} : memref<8x4x512xf32, #tpu.memory_space<vmem>>, vector<1x4x512xf32>,
    %c0_16 = arith.constant 0 : index
    %c2 = arith.constant 2 : index
    %c0_17 = arith.constant 0 : index
    %21 = vector.load %arg2[%c0_16, %c2, %c0_17] : memref<4x8x16xf32, #tpu.memory_space<vmem>>, vector<4x1x16xf32>
    %22 = vector.shape_cast %21 : vector<4x1x16xf32> to vector<4x16xf32>
    %cst_18 = arith.constant dense<0.000000e+00> : vector<4x512xf32>
    %23 = tpu.matmul %22, %3, %cst_18 {dimension_numbers = #tpu.dot_dimension_numbers<[1], [0], [0], [1], [0, 0, 1, 1], [], []>} : vector<4x16xf32>, vector<16x512xf32>, vector<4x512xf32> -> vector<4x512xf32>
    %24 = arith.addf %23, %6 : vector<4x512xf32>
    %c2_19 = arith.constant 2 : index
    %c0_20 = arith.constant 0 : index
    %c0_21 = arith.constant 0 : index
    %25 = vector.load %arg7[%c2_19, %c0_20, %c0_21] : memref<8x4x512xf32, #tpu.memory_space<vmem>>, vector<1x4x512xf32>
    %26 = vector.shape_cast %25 : vector<1x4x512xf32> to vector<4x512xf32>
    %27 = vector.shape_cast %24 : vector<4x512xf32> to vector<1x4x512xf32>
    tpu.vector_store %arg7[%c2_19, %c0_20, %c0_21], %27 {strides = array<i32>} : memref<8x4x512xf32, #tpu.memory_space<vmem>>, vector<1x4x512xf32>,
    %c0_22 = arith.constant 0 : index
    %c3 = arith.constant 3 : index
    %c0_23 = arith.constant 0 : index
    %28 = vector.load %arg2[%c0_22, %c3, %c0_23] : memref<4x8x16xf32, #tpu.memory_space<vmem>>, vector<4x1x16xf32>
    %29 = vector.shape_cast %28 : vector<4x1x16xf32> to vector<4x16xf32>
    %cst_24 = arith.constant dense<0.000000e+00> : vector<4x512xf32>
    %30 = tpu.matmul %29, %3, %cst_24 {dimension_numbers = #tpu.dot_dimension_numbers<[1], [0], [0], [1], [0, 0, 1, 1], [], []>} : vector<4x16xf32>, vector<16x512xf32>, vector<4x512xf32> -> vector<4x512xf32>
    %31 = arith.addf %30, %6 : vector<4x512xf32>
    %c3_25 = arith.constant 3 : index
    %c0_26 = arith.constant 0 : index
    %c0_27 = arith.constant 0 : index
    %32 = vector.load %arg7[%c3_25, %c0_26, %c0_27] : memref<8x4x512xf32, #tpu.memory_space<vmem>>, vector<1x4x512xf32>
    %33 = vector.shape_cast %32 : vector<1x4x512xf32> to vector<4x512xf32>
    %34 = vector.shape_cast %31 : vector<4x512xf32> to vector<1x4x512xf32>
    tpu.vector_store %arg7[%c3_25, %c0_26, %c0_27], %34 {strides = array<i32>} : memref<8x4x512xf32, #tpu.memory_space<vmem>>, vector<1x4x512xf32>,
    %c0_28 = arith.constant 0 : index
    %c4 = arith.constant 4 : index
    %c0_29 = arith.constant 0 : index
    %35 = vector.load %arg2[%c0_28, %c4, %c0_29] : memref<4x8x16xf32, #tpu.memory_space<vmem>>, vector<4x1x16xf32>
    %36 = vector.shape_cast %35 : vector<4x1x16xf32> to vector<4x16xf32>
    %cst_30 = arith.constant dense<0.000000e+00> : vector<4x512xf32>
    %37 = tpu.matmul %36, %3, %cst_30 {dimension_numbers = #tpu.dot_dimension_numbers<[1], [0], [0], [1], [0, 0, 1, 1], [], []>} : vector<4x16xf32>, vector<16x512xf32>, vector<4x512xf32> -> vector<4x512xf32>
    %38 = arith.addf %37, %6 : vector<4x512xf32>
    %c4_31 = arith.constant 4 : index
    %c0_32 = arith.constant 0 : index
    %c0_33 = arith.constant 0 : index
    %39 = vector.load %arg7[%c4_31, %c0_32, %c0_33] : memref<8x4x512xf32, #tpu.memory_space<vmem>>, vector<1x4x512xf32>
    %40 = vector.shape_cast %39 : vector<1x4x512xf32> to vector<4x512xf32>
    %41 = vector.shape_cast %38 : vector<4x512xf32> to vector<1x4x512xf32>
    tpu.vector_store %arg7[%c4_31, %c0_32, %c0_33], %41 {strides = array<i32>} : memref<8x4x512xf32, #tpu.memory_space<vmem>>, vector<1x4x512xf32>,
    %c0_34 = arith.constant 0 : index
    %c5 = arith.constant 5 : index
    %c0_35 = arith.constant 0 : index
    %42 = vector.load %arg2[%c0_34, %c5, %c0_35] : memref<4x8x16xf32, #tpu.memory_space<vmem>>, vector<4x1x16xf32>
    %43 = vector.shape_cast %42 : vector<4x1x16xf32> to vector<4x16xf32>
    %cst_36 = arith.constant dense<0.000000e+00> : vector<4x512xf32>
    %44 = tpu.matmul %43, %3, %cst_36 {dimension_numbers = #tpu.dot_dimension_numbers<[1], [0], [0], [1], [0, 0, 1, 1], [], []>} : vector<4x16xf32>, vector<16x512xf32>, vector<4x512xf32> -> vector<4x512xf32>
    %45 = arith.addf %44, %6 : vector<4x512xf32>
    %c5_37 = arith.constant 5 : index
    %c0_38 = arith.constant 0 : index
    %c0_39 = arith.constant 0 : index
    %46 = vector.load %arg7[%c5_37, %c0_38, %c0_39] : memref<8x4x512xf32, #tpu.memory_space<vmem>>, vector<1x4x512xf32>
    %47 = vector.shape_cast %46 : vector<1x4x512xf32> to vector<4x512xf32>
    %48 = vector.shape_cast %45 : vector<4x512xf32> to vector<1x4x512xf32>
    tpu.vector_store %arg7[%c5_37, %c0_38, %c0_39], %48 {strides = array<i32>} : memref<8x4x512xf32, #tpu.memory_space<vmem>>, vector<1x4x512xf32>,
    %c0_40 = arith.constant 0 : index
    %c6 = arith.constant 6 : index
    %c0_41 = arith.constant 0 : index
    %49 = vector.load %arg2[%c0_40, %c6, %c0_41] : memref<4x8x16xf32, #tpu.memory_space<vmem>>, vector<4x1x16xf32>
    %50 = vector.shape_cast %49 : vector<4x1x16xf32> to vector<4x16xf32>
    %cst_42 = arith.constant dense<0.000000e+00> : vector<4x512xf32>
    %51 = tpu.matmul %50, %3, %cst_42 {dimension_numbers = #tpu.dot_dimension_numbers<[1], [0], [0], [1], [0, 0, 1, 1], [], []>} : vector<4x16xf32>, vector<16x512xf32>, vector<4x512xf32> -> vector<4x512xf32>
    %52 = arith.addf %51, %6 : vector<4x512xf32>
    %c6_43 = arith.constant 6 : index
    %c0_44 = arith.constant 0 : index
    %c0_45 = arith.constant 0 : index
    %53 = vector.load %arg7[%c6_43, %c0_44, %c0_45] : memref<8x4x512xf32, #tpu.memory_space<vmem>>, vector<1x4x512xf32>
    %54 = vector.shape_cast %53 : vector<1x4x512xf32> to vector<4x512xf32>
    %55 = vector.shape_cast %52 : vector<4x512xf32> to vector<1x4x512xf32>
    tpu.vector_store %arg7[%c6_43, %c0_44, %c0_45], %55 {strides = array<i32>} : memref<8x4x512xf32, #tpu.memory_space<vmem>>, vector<1x4x512xf32>,
    %c0_46 = arith.constant 0 : index
    %c7 = arith.constant 7 : index
    %c0_47 = arith.constant 0 : index
    %56 = vector.load %arg2[%c0_46, %c7, %c0_47] : memref<4x8x16xf32, #tpu.memory_space<vmem>>, vector<4x1x16xf32>
    %57 = vector.shape_cast %56 : vector<4x1x16xf32> to vector<4x16xf32>
    %cst_48 = arith.constant dense<0.000000e+00> : vector<4x512xf32>
    %58 = tpu.matmul %57, %3, %cst_48 {dimension_numbers = #tpu.dot_dimension_numbers<[1], [0], [0], [1], [0, 0, 1, 1], [], []>} : vector<4x16xf32>, vector<16x512xf32>, vector<4x512xf32> -> vector<4x512xf32>
    %59 = arith.addf %58, %6 : vector<4x512xf32>
    %c7_49 = arith.constant 7 : index
    %c0_50 = arith.constant 0 : index
    %c0_51 = arith.constant 0 : index
    %60 = vector.load %arg7[%c7_49, %c0_50, %c0_51] : memref<8x4x512xf32, #tpu.memory_space<vmem>>, vector<1x4x512xf32>
    %61 = vector.shape_cast %60 : vector<1x4x512xf32> to vector<4x512xf32>
    %62 = vector.shape_cast %59 : vector<4x512xf32> to vector<1x4x512xf32>
    tpu.vector_store %arg7[%c7_49, %c0_50, %c0_51], %62 {strides = array<i32>} : memref<8x4x512xf32, #tpu.memory_space<vmem>>, vector<1x4x512xf32>,
    %c0_52 = arith.constant 0 : index
    %c0_53 = arith.constant 0 : index
    %63 = vector.load %arg4[%c0_52, %c0_53] : memref<128x512xf32, #tpu.memory_space<vmem>>, vector<128x384xf32>
    %c0_54 = arith.constant 0 : index
    %c384 = arith.constant 384 : index
    %64 = vector.load %arg4[%c0_54, %c384] : memref<128x512xf32, #tpu.memory_space<vmem>>, vector<128x128xf32>
    %c0_55 = arith.constant 0 : index
    %c0_56 = arith.constant 0 : index
    %65 = vector.load %arg8[%c0_55, %c0_56] : memref<4x128xf32, #tpu.memory_space<vmem>>, vector<4x128xf32>
    %c0_57 = arith.constant 0 : index
    %c0_58 = arith.constant 0 : index
    %66 = vector.load %arg9[%c0_57, %c0_58] : memref<4x128xf32, #tpu.memory_space<vmem>>, vector<4x128xf32>
    %c0_i32_59 = arith.constant 0 : i32
    %67 = arith.index_cast %c0_i32_59 : i32 to index
    %c0_60 = arith.constant 0 : index
    %c0_61 = arith.constant 0 : index
    %68 = vector.load %arg7[%67, %c0_60, %c0_61] : memref<8x4x512xf32, #tpu.memory_space<vmem>>, vector<1x4x384xf32>
    %69 = vector.shape_cast %68 : vector<1x4x384xf32> to vector<4x384xf32>
    %cst_62 = arith.constant dense<0.000000e+00> : vector<4x384xf32>
    %70 = tpu.matmul %65, %63, %cst_62 {dimension_numbers = #tpu.dot_dimension_numbers<[1], [0], [0], [1], [0, 0, 1, 1], [], []>} : vector<4x128xf32>, vector<128x384xf32>, vector<4x384xf32> -> vector<4x384xf32>
    %71 = arith.addf %69, %70 : vector<4x384xf32>
    %cst_63 = arith.constant 5.000000e-01 : f32
    %72 = vector.broadcast %cst_63 : f32 to vector<4x384xf32>
    %73 = arith.mulf %72, %71 : vector<4x384xf32>
    %74 = math.tanh %73 : vector<4x384xf32>
    %cst_64 = arith.constant 1.000000e+00 : f32
    %75 = vector.broadcast %cst_64 : f32 to vector<4x384xf32>
    %76 = arith.addf %74, %75 : vector<4x384xf32>
    %cst_65 = arith.constant 5.000000e-01 : f32
    %77 = vector.broadcast %cst_65 : f32 to vector<4x384xf32>
    %78 = arith.mulf %77, %76 : vector<4x384xf32>
    %79 = vector.extract_strided_slice %78 {offsets = [0, 0], sizes = [4, 128], strides = [1, 1]} : vector<4x384xf32> to vector<4x128xf32>
    %80 = vector.extract_strided_slice %78 {offsets = [0, 128], sizes = [4, 128], strides = [1, 1]} : vector<4x384xf32> to vector<4x128xf32>
    %81 = vector.extract_strided_slice %78 {offsets = [0, 256], sizes = [4, 128], strides = [1, 1]} : vector<4x384xf32> to vector<4x128xf32>
    %82 = arith.index_cast %c0_i32_59 : i32 to index
    %c0_66 = arith.constant 0 : index
    %c384_67 = arith.constant 384 : index
    %83 = vector.load %arg7[%82, %c0_66, %c384_67] : memref<8x4x512xf32, #tpu.memory_space<vmem>>, vector<1x4x128xf32>
    %84 = vector.shape_cast %83 : vector<1x4x128xf32> to vector<4x128xf32>
    %cst_68 = arith.constant dense<0.000000e+00> : vector<4x128xf32>
    %85 = tpu.matmul %65, %64, %cst_68 {dimension_numbers = #tpu.dot_dimension_numbers<[1], [0], [0], [1], [0, 0, 1, 1], [], []>} : vector<4x128xf32>, vector<128x128xf32>, vector<4x128xf32> -> vector<4x128xf32>
    %86 = arith.addf %84, %85 : vector<4x128xf32>
    %87 = math.tanh %86 : vector<4x128xf32>
    %88 = arith.mulf %80, %66 : vector<4x128xf32>
    %89 = arith.mulf %79, %87 : vector<4x128xf32>
    %90 = arith.addf %88, %89 : vector<4x128xf32>
    %91 = math.tanh %90 : vector<4x128xf32>
    %92 = arith.mulf %81, %91 : vector<4x128xf32>
    %c1_i32 = arith.constant 1 : i32
    %93 = arith.index_cast %c1_i32 : i32 to index
    %c0_69 = arith.constant 0 : index
    %c0_70 = arith.constant 0 : index
    %94 = vector.load %arg7[%93, %c0_69, %c0_70] : memref<8x4x512xf32, #tpu.memory_space<vmem>>, vector<1x4x384xf32>
    %95 = vector.shape_cast %94 : vector<1x4x384xf32> to vector<4x384xf32>
    %cst_71 = arith.constant dense<0.000000e+00> : vector<4x384xf32>
    %96 = tpu.matmul %92, %63, %cst_71 {dimension_numbers = #tpu.dot_dimension_numbers<[1], [0], [0], [1], [0, 0, 1, 1], [], []>} : vector<4x128xf32>, vector<128x384xf32>, vector<4x384xf32> -> vector<4x384xf32>
    %97 = arith.addf %95, %96 : vector<4x384xf32>
    %cst_72 = arith.constant 5.000000e-01 : f32
    %98 = vector.broadcast %cst_72 : f32 to vector<4x384xf32>
    %99 = arith.mulf %98, %97 : vector<4x384xf32>
    %100 = math.tanh %99 : vector<4x384xf32>
    %cst_73 = arith.constant 1.000000e+00 : f32
    %101 = vector.broadcast %cst_73 : f32 to vector<4x384xf32>
    %102 = arith.addf %100, %101 : vector<4x384xf32>
    %cst_74 = arith.constant 5.000000e-01 : f32
    %103 = vector.broadcast %cst_74 : f32 to vector<4x384xf32>
    %104 = arith.mulf %103, %102 : vector<4x384xf32>
    %105 = vector.extract_strided_slice %104 {offsets = [0, 0], sizes = [4, 128], strides = [1, 1]} : vector<4x384xf32> to vector<4x128xf32>
    %106 = vector.extract_strided_slice %104 {offsets = [0, 128], sizes = [4, 128], strides = [1, 1]} : vector<4x384xf32> to vector<4x128xf32>
    %107 = vector.extract_strided_slice %104 {offsets = [0, 256], sizes = [4, 128], strides = [1, 1]} : vector<4x384xf32> to vector<4x128xf32>
    %108 = arith.index_cast %c1_i32 : i32 to index
    %c0_75 = arith.constant 0 : index
    %c384_76 = arith.constant 384 : index
    %109 = vector.load %arg7[%108, %c0_75, %c384_76] : memref<8x4x512xf32, #tpu.memory_space<vmem>>, vector<1x4x128xf32>
    %110 = vector.shape_cast %109 : vector<1x4x128xf32> to vector<4x128xf32>
    %cst_77 = arith.constant dense<0.000000e+00> : vector<4x128xf32>
    %111 = tpu.matmul %92, %64, %cst_77 {dimension_numbers = #tpu.dot_dimension_numbers<[1], [0], [0], [1], [0, 0, 1, 1], [], []>} : vector<4x128xf32>, vector<128x128xf32>, vector<4x128xf32> -> vector<4x128xf32>
    %112 = arith.addf %110, %111 : vector<4x128xf32>
    %113 = math.tanh %112 : vector<4x128xf32>
    %114 = arith.mulf %106, %90 : vector<4x128xf32>
    %115 = arith.mulf %105, %113 : vector<4x128xf32>
    %116 = arith.addf %114, %115 : vector<4x128xf32>
    %117 = math.tanh %116 : vector<4x128xf32>
    %118 = arith.mulf %107, %117 : vector<4x128xf32>
    %c2_i32 = arith.constant 2 : i32
    %119 = arith.index_cast %c2_i32 : i32 to index
    %c0_78 = arith.constant 0 : index
    %c0_79 = arith.constant 0 : index
    %120 = vector.load %arg7[%119, %c0_78, %c0_79] : memref<8x4x512xf32, #tpu.memory_space<vmem>>, vector<1x4x384xf32>
    %121 = vector.shape_cast %120 : vector<1x4x384xf32> to vector<4x384xf32>
    %cst_80 = arith.constant dense<0.000000e+00> : vector<4x384xf32>
    %122 = tpu.matmul %118, %63, %cst_80 {dimension_numbers = #tpu.dot_dimension_numbers<[1], [0], [0], [1], [0, 0, 1, 1], [], []>} : vector<4x128xf32>, vector<128x384xf32>, vector<4x384xf32> -> vector<4x384xf32>
    %123 = arith.addf %121, %122 : vector<4x384xf32>
    %cst_81 = arith.constant 5.000000e-01 : f32
    %124 = vector.broadcast %cst_81 : f32 to vector<4x384xf32>
    %125 = arith.mulf %124, %123 : vector<4x384xf32>
    %126 = math.tanh %125 : vector<4x384xf32>
    %cst_82 = arith.constant 1.000000e+00 : f32
    %127 = vector.broadcast %cst_82 : f32 to vector<4x384xf32>
    %128 = arith.addf %126, %127 : vector<4x384xf32>
    %cst_83 = arith.constant 5.000000e-01 : f32
    %129 = vector.broadcast %cst_83 : f32 to vector<4x384xf32>
    %130 = arith.mulf %129, %128 : vector<4x384xf32>
    %131 = vector.extract_strided_slice %130 {offsets = [0, 0], sizes = [4, 128], strides = [1, 1]} : vector<4x384xf32> to vector<4x128xf32>
    %132 = vector.extract_strided_slice %130 {offsets = [0, 128], sizes = [4, 128], strides = [1, 1]} : vector<4x384xf32> to vector<4x128xf32>
    %133 = vector.extract_strided_slice %130 {offsets = [0, 256], sizes = [4, 128], strides = [1, 1]} : vector<4x384xf32> to vector<4x128xf32>
    %134 = arith.index_cast %c2_i32 : i32 to index
    %c0_84 = arith.constant 0 : index
    %c384_85 = arith.constant 384 : index
    %135 = vector.load %arg7[%134, %c0_84, %c384_85] : memref<8x4x512xf32, #tpu.memory_space<vmem>>, vector<1x4x128xf32>
    %136 = vector.shape_cast %135 : vector<1x4x128xf32> to vector<4x128xf32>
    %cst_86 = arith.constant dense<0.000000e+00> : vector<4x128xf32>
    %137 = tpu.matmul %118, %64, %cst_86 {dimension_numbers = #tpu.dot_dimension_numbers<[1], [0], [0], [1], [0, 0, 1, 1], [], []>} : vector<4x128xf32>, vector<128x128xf32>, vector<4x128xf32> -> vector<4x128xf32>
    %138 = arith.addf %136, %137 : vector<4x128xf32>
    %139 = math.tanh %138 : vector<4x128xf32>
    %140 = arith.mulf %132, %116 : vector<4x128xf32>
    %141 = arith.mulf %131, %139 : vector<4x128xf32>
    %142 = arith.addf %140, %141 : vector<4x128xf32>
    %143 = math.tanh %142 : vector<4x128xf32>
    %144 = arith.mulf %133, %143 : vector<4x128xf32>
    %c3_i32 = arith.constant 3 : i32
    %145 = arith.index_cast %c3_i32 : i32 to index
    %c0_87 = arith.constant 0 : index
    %c0_88 = arith.constant 0 : index
    %146 = vector.load %arg7[%145, %c0_87, %c0_88] : memref<8x4x512xf32, #tpu.memory_space<vmem>>, vector<1x4x384xf32>
    %147 = vector.shape_cast %146 : vector<1x4x384xf32> to vector<4x384xf32>
    %cst_89 = arith.constant dense<0.000000e+00> : vector<4x384xf32>
    %148 = tpu.matmul %144, %63, %cst_89 {dimension_numbers = #tpu.dot_dimension_numbers<[1], [0], [0], [1], [0, 0, 1, 1], [], []>} : vector<4x128xf32>, vector<128x384xf32>, vector<4x384xf32> -> vector<4x384xf32>
    %149 = arith.addf %147, %148 : vector<4x384xf32>
    %cst_90 = arith.constant 5.000000e-01 : f32
    %150 = vector.broadcast %cst_90 : f32 to vector<4x384xf32>
    %151 = arith.mulf %150, %149 : vector<4x384xf32>
    %152 = math.tanh %151 : vector<4x384xf32>
    %cst_91 = arith.constant 1.000000e+00 : f32
    %153 = vector.broadcast %cst_91 : f32 to vector<4x384xf32>
    %154 = arith.addf %152, %153 : vector<4x384xf32>
    %cst_92 = arith.constant 5.000000e-01 : f32
    %155 = vector.broadcast %cst_92 : f32 to vector<4x384xf32>
    %156 = arith.mulf %155, %154 : vector<4x384xf32>
    %157 = vector.extract_strided_slice %156 {offsets = [0, 0], sizes = [4, 128], strides = [1, 1]} : vector<4x384xf32> to vector<4x128xf32>
    %158 = vector.extract_strided_slice %156 {offsets = [0, 128], sizes = [4, 128], strides = [1, 1]} : vector<4x384xf32> to vector<4x128xf32>
    %159 = vector.extract_strided_slice %156 {offsets = [0, 256], sizes = [4, 128], strides = [1, 1]} : vector<4x384xf32> to vector<4x128xf32>
    %160 = arith.index_cast %c3_i32 : i32 to index
    %c0_93 = arith.constant 0 : index
    %c384_94 = arith.constant 384 : index
    %161 = vector.load %arg7[%160, %c0_93, %c384_94] : memref<8x4x512xf32, #tpu.memory_space<vmem>>, vector<1x4x128xf32>
    %162 = vector.shape_cast %161 : vector<1x4x128xf32> to vector<4x128xf32>
    %cst_95 = arith.constant dense<0.000000e+00> : vector<4x128xf32>
    %163 = tpu.matmul %144, %64, %cst_95 {dimension_numbers = #tpu.dot_dimension_numbers<[1], [0], [0], [1], [0, 0, 1, 1], [], []>} : vector<4x128xf32>, vector<128x128xf32>, vector<4x128xf32> -> vector<4x128xf32>
    %164 = arith.addf %162, %163 : vector<4x128xf32>
    %165 = math.tanh %164 : vector<4x128xf32>
    %166 = arith.mulf %158, %142 : vector<4x128xf32>
    %167 = arith.mulf %157, %165 : vector<4x128xf32>
    %168 = arith.addf %166, %167 : vector<4x128xf32>
    %169 = math.tanh %168 : vector<4x128xf32>
    %170 = arith.mulf %159, %169 : vector<4x128xf32>
    %c4_i32 = arith.constant 4 : i32
    %171 = arith.index_cast %c4_i32 : i32 to index
    %c0_96 = arith.constant 0 : index
    %c0_97 = arith.constant 0 : index
    %172 = vector.load %arg7[%171, %c0_96, %c0_97] : memref<8x4x512xf32, #tpu.memory_space<vmem>>, vector<1x4x384xf32>
    %173 = vector.shape_cast %172 : vector<1x4x384xf32> to vector<4x384xf32>
    %cst_98 = arith.constant dense<0.000000e+00> : vector<4x384xf32>
    %174 = tpu.matmul %170, %63, %cst_98 {dimension_numbers = #tpu.dot_dimension_numbers<[1], [0], [0], [1], [0, 0, 1, 1], [], []>} : vector<4x128xf32>, vector<128x384xf32>, vector<4x384xf32> -> vector<4x384xf32>
    %175 = arith.addf %173, %174 : vector<4x384xf32>
    %cst_99 = arith.constant 5.000000e-01 : f32
    %176 = vector.broadcast %cst_99 : f32 to vector<4x384xf32>
    %177 = arith.mulf %176, %175 : vector<4x384xf32>
    %178 = math.tanh %177 : vector<4x384xf32>
    %cst_100 = arith.constant 1.000000e+00 : f32
    %179 = vector.broadcast %cst_100 : f32 to vector<4x384xf32>
    %180 = arith.addf %178, %179 : vector<4x384xf32>
    %cst_101 = arith.constant 5.000000e-01 : f32
    %181 = vector.broadcast %cst_101 : f32 to vector<4x384xf32>
    %182 = arith.mulf %181, %180 : vector<4x384xf32>
    %183 = vector.extract_strided_slice %182 {offsets = [0, 0], sizes = [4, 128], strides = [1, 1]} : vector<4x384xf32> to vector<4x128xf32>
    %184 = vector.extract_strided_slice %182 {offsets = [0, 128], sizes = [4, 128], strides = [1, 1]} : vector<4x384xf32> to vector<4x128xf32>
    %185 = vector.extract_strided_slice %182 {offsets = [0, 256], sizes = [4, 128], strides = [1, 1]} : vector<4x384xf32> to vector<4x128xf32>
    %186 = arith.index_cast %c4_i32 : i32 to index
    %c0_102 = arith.constant 0 : index
    %c384_103 = arith.constant 384 : index
    %187 = vector.load %arg7[%186, %c0_102, %c384_103] : memref<8x4x512xf32, #tpu.memory_space<vmem>>, vector<1x4x128xf32>
    %188 = vector.shape_cast %187 : vector<1x4x128xf32> to vector<4x128xf32>
    %cst_104 = arith.constant dense<0.000000e+00> : vector<4x128xf32>
    %189 = tpu.matmul %170, %64, %cst_104 {dimension_numbers = #tpu.dot_dimension_numbers<[1], [0], [0], [1], [0, 0, 1, 1], [], []>} : vector<4x128xf32>, vector<128x128xf32>, vector<4x128xf32> -> vector<4x128xf32>
    %190 = arith.addf %188, %189 : vector<4x128xf32>
    %191 = math.tanh %190 : vector<4x128xf32>
    %192 = arith.mulf %184, %168 : vector<4x128xf32>
    %193 = arith.mulf %183, %191 : vector<4x128xf32>
    %194 = arith.addf %192, %193 : vector<4x128xf32>
    %195 = math.tanh %194 : vector<4x128xf32>
    %196 = arith.mulf %185, %195 : vector<4x128xf32>
    %c5_i32 = arith.constant 5 : i32
    %197 = arith.index_cast %c5_i32 : i32 to index
    %c0_105 = arith.constant 0 : index
    %c0_106 = arith.constant 0 : index
    %198 = vector.load %arg7[%197, %c0_105, %c0_106] : memref<8x4x512xf32, #tpu.memory_space<vmem>>, vector<1x4x384xf32>
    %199 = vector.shape_cast %198 : vector<1x4x384xf32> to vector<4x384xf32>
    %cst_107 = arith.constant dense<0.000000e+00> : vector<4x384xf32>
    %200 = tpu.matmul %196, %63, %cst_107 {dimension_numbers = #tpu.dot_dimension_numbers<[1], [0], [0], [1], [0, 0, 1, 1], [], []>} : vector<4x128xf32>, vector<128x384xf32>, vector<4x384xf32> -> vector<4x384xf32>
    %201 = arith.addf %199, %200 : vector<4x384xf32>
    %cst_108 = arith.constant 5.000000e-01 : f32
    %202 = vector.broadcast %cst_108 : f32 to vector<4x384xf32>
    %203 = arith.mulf %202, %201 : vector<4x384xf32>
    %204 = math.tanh %203 : vector<4x384xf32>
    %cst_109 = arith.constant 1.000000e+00 : f32
    %205 = vector.broadcast %cst_109 : f32 to vector<4x384xf32>
    %206 = arith.addf %204, %205 : vector<4x384xf32>
    %cst_110 = arith.constant 5.000000e-01 : f32
    %207 = vector.broadcast %cst_110 : f32 to vector<4x384xf32>
    %208 = arith.mulf %207, %206 : vector<4x384xf32>
    %209 = vector.extract_strided_slice %208 {offsets = [0, 0], sizes = [4, 128], strides = [1, 1]} : vector<4x384xf32> to vector<4x128xf32>
    %210 = vector.extract_strided_slice %208 {offsets = [0, 128], sizes = [4, 128], strides = [1, 1]} : vector<4x384xf32> to vector<4x128xf32>
    %211 = vector.extract_strided_slice %208 {offsets = [0, 256], sizes = [4, 128], strides = [1, 1]} : vector<4x384xf32> to vector<4x128xf32>
    %212 = arith.index_cast %c5_i32 : i32 to index
    %c0_111 = arith.constant 0 : index
    %c384_112 = arith.constant 384 : index
    %213 = vector.load %arg7[%212, %c0_111, %c384_112] : memref<8x4x512xf32, #tpu.memory_space<vmem>>, vector<1x4x128xf32>
    %214 = vector.shape_cast %213 : vector<1x4x128xf32> to vector<4x128xf32>
    %cst_113 = arith.constant dense<0.000000e+00> : vector<4x128xf32>
    %215 = tpu.matmul %196, %64, %cst_113 {dimension_numbers = #tpu.dot_dimension_numbers<[1], [0], [0], [1], [0, 0, 1, 1], [], []>} : vector<4x128xf32>, vector<128x128xf32>, vector<4x128xf32> -> vector<4x128xf32>
    %216 = arith.addf %214, %215 : vector<4x128xf32>
    %217 = math.tanh %216 : vector<4x128xf32>
    %218 = arith.mulf %210, %194 : vector<4x128xf32>
    %219 = arith.mulf %209, %217 : vector<4x128xf32>
    %220 = arith.addf %218, %219 : vector<4x128xf32>
    %221 = math.tanh %220 : vector<4x128xf32>
    %222 = arith.mulf %211, %221 : vector<4x128xf32>
    %c6_i32 = arith.constant 6 : i32
    %223 = arith.index_cast %c6_i32 : i32 to index
    %c0_114 = arith.constant 0 : index
    %c0_115 = arith.constant 0 : index
    %224 = vector.load %arg7[%223, %c0_114, %c0_115] : memref<8x4x512xf32, #tpu.memory_space<vmem>>, vector<1x4x384xf32>
    %225 = vector.shape_cast %224 : vector<1x4x384xf32> to vector<4x384xf32>
    %cst_116 = arith.constant dense<0.000000e+00> : vector<4x384xf32>
    %226 = tpu.matmul %222, %63, %cst_116 {dimension_numbers = #tpu.dot_dimension_numbers<[1], [0], [0], [1], [0, 0, 1, 1], [], []>} : vector<4x128xf32>, vector<128x384xf32>, vector<4x384xf32> -> vector<4x384xf32>
    %227 = arith.addf %225, %226 : vector<4x384xf32>
    %cst_117 = arith.constant 5.000000e-01 : f32
    %228 = vector.broadcast %cst_117 : f32 to vector<4x384xf32>
    %229 = arith.mulf %228, %227 : vector<4x384xf32>
    %230 = math.tanh %229 : vector<4x384xf32>
    %cst_118 = arith.constant 1.000000e+00 : f32
    %231 = vector.broadcast %cst_118 : f32 to vector<4x384xf32>
    %232 = arith.addf %230, %231 : vector<4x384xf32>
    %cst_119 = arith.constant 5.000000e-01 : f32
    %233 = vector.broadcast %cst_119 : f32 to vector<4x384xf32>
    %234 = arith.mulf %233, %232 : vector<4x384xf32>
    %235 = vector.extract_strided_slice %234 {offsets = [0, 0], sizes = [4, 128], strides = [1, 1]} : vector<4x384xf32> to vector<4x128xf32>
    %236 = vector.extract_strided_slice %234 {offsets = [0, 128], sizes = [4, 128], strides = [1, 1]} : vector<4x384xf32> to vector<4x128xf32>
    %237 = vector.extract_strided_slice %234 {offsets = [0, 256], sizes = [4, 128], strides = [1, 1]} : vector<4x384xf32> to vector<4x128xf32>
    %238 = arith.index_cast %c6_i32 : i32 to index
    %c0_120 = arith.constant 0 : index
    %c384_121 = arith.constant 384 : index
    %239 = vector.load %arg7[%238, %c0_120, %c384_121] : memref<8x4x512xf32, #tpu.memory_space<vmem>>, vector<1x4x128xf32>
    %240 = vector.shape_cast %239 : vector<1x4x128xf32> to vector<4x128xf32>
    %cst_122 = arith.constant dense<0.000000e+00> : vector<4x128xf32>
    %241 = tpu.matmul %222, %64, %cst_122 {dimension_numbers = #tpu.dot_dimension_numbers<[1], [0], [0], [1], [0, 0, 1, 1], [], []>} : vector<4x128xf32>, vector<128x128xf32>, vector<4x128xf32> -> vector<4x128xf32>
    %242 = arith.addf %240, %241 : vector<4x128xf32>
    %243 = math.tanh %242 : vector<4x128xf32>
    %244 = arith.mulf %236, %220 : vector<4x128xf32>
    %245 = arith.mulf %235, %243 : vector<4x128xf32>
    %246 = arith.addf %244, %245 : vector<4x128xf32>
    %247 = math.tanh %246 : vector<4x128xf32>
    %248 = arith.mulf %237, %247 : vector<4x128xf32>
    %c7_i32 = arith.constant 7 : i32
    %249 = arith.index_cast %c7_i32 : i32 to index
    %c0_123 = arith.constant 0 : index
    %c0_124 = arith.constant 0 : index
    %250 = vector.load %arg7[%249, %c0_123, %c0_124] : memref<8x4x512xf32, #tpu.memory_space<vmem>>, vector<1x4x384xf32>
    %251 = vector.shape_cast %250 : vector<1x4x384xf32> to vector<4x384xf32>
    %cst_125 = arith.constant dense<0.000000e+00> : vector<4x384xf32>
    %252 = tpu.matmul %248, %63, %cst_125 {dimension_numbers = #tpu.dot_dimension_numbers<[1], [0], [0], [1], [0, 0, 1, 1], [], []>} : vector<4x128xf32>, vector<128x384xf32>, vector<4x384xf32> -> vector<4x384xf32>
    %253 = arith.addf %251, %252 : vector<4x384xf32>
    %cst_126 = arith.constant 5.000000e-01 : f32
    %254 = vector.broadcast %cst_126 : f32 to vector<4x384xf32>
    %255 = arith.mulf %254, %253 : vector<4x384xf32>
    %256 = math.tanh %255 : vector<4x384xf32>
    %cst_127 = arith.constant 1.000000e+00 : f32
    %257 = vector.broadcast %cst_127 : f32 to vector<4x384xf32>
    %258 = arith.addf %256, %257 : vector<4x384xf32>
    %cst_128 = arith.constant 5.000000e-01 : f32
    %259 = vector.broadcast %cst_128 : f32 to vector<4x384xf32>
    %260 = arith.mulf %259, %258 : vector<4x384xf32>
    %261 = vector.extract_strided_slice %260 {offsets = [0, 0], sizes = [4, 128], strides = [1, 1]} : vector<4x384xf32> to vector<4x128xf32>
    %262 = vector.extract_strided_slice %260 {offsets = [0, 128], sizes = [4, 128], strides = [1, 1]} : vector<4x384xf32> to vector<4x128xf32>
    %263 = vector.extract_strided_slice %260 {offsets = [0, 256], sizes = [4, 128], strides = [1, 1]} : vector<4x384xf32> to vector<4x128xf32>
    %264 = arith.index_cast %c7_i32 : i32 to index
    %c0_129 = arith.constant 0 : index
    %c384_130 = arith.constant 384 : index
    %265 = vector.load %arg7[%264, %c0_129, %c384_130] : memref<8x4x512xf32, #tpu.memory_space<vmem>>, vector<1x4x128xf32>
    %266 = vector.shape_cast %265 : vector<1x4x128xf32> to vector<4x128xf32>
    %cst_131 = arith.constant dense<0.000000e+00> : vector<4x128xf32>
    %267 = tpu.matmul %248, %64, %cst_131 {dimension_numbers = #tpu.dot_dimension_numbers<[1], [0], [0], [1], [0, 0, 1, 1], [], []>} : vector<4x128xf32>, vector<128x128xf32>, vector<4x128xf32> -> vector<4x128xf32>
    %268 = arith.addf %266, %267 : vector<4x128xf32>
    %269 = math.tanh %268 : vector<4x128xf32>
    %270 = arith.mulf %262, %246 : vector<4x128xf32>
    %271 = arith.mulf %261, %269 : vector<4x128xf32>
    %272 = arith.addf %270, %271 : vector<4x128xf32>
    %273 = math.tanh %272 : vector<4x128xf32>
    %274 = arith.mulf %263, %273 : vector<4x128xf32>
    %c8_i32 = arith.constant 8 : i32
    %c0_132 = arith.constant 0 : index
    %c0_133 = arith.constant 0 : index
    %275 = vector.load %arg8[%c0_132, %c0_133] : memref<4x128xf32, #tpu.memory_space<vmem>>, vector<4x128xf32>
    tpu.vector_store %arg8[%c0_132, %c0_133], %274 {strides = array<i32>} : memref<4x128xf32, #tpu.memory_space<vmem>>, vector<4x128xf32>,
    %c0_134 = arith.constant 0 : index
    %c0_135 = arith.constant 0 : index
    %276 = vector.load %arg9[%c0_134, %c0_135] : memref<4x128xf32, #tpu.memory_space<vmem>>, vector<4x128xf32>
    tpu.vector_store %arg9[%c0_134, %c0_135], %272 {strides = array<i32>} : memref<4x128xf32, #tpu.memory_space<vmem>>, vector<4x128xf32>,
    %c1_i32_136 = arith.constant 1 : i32
    %277 = arith.cmpi eq, %arg1, %c1_i32_136 : i32
    %278 = arith.extui %277 : i1 to i32
    %c0_i32_137 = arith.constant 0 : i32
    %279 = arith.cmpi ne, %278, %c0_i32_137 : i32
    scf.if %279 {
      %c0_138 = arith.constant 0 : index
      %c0_139 = arith.constant 0 : index
      %280 = vector.load %arg6[%c0_138, %c0_139] : memref<4x128xf32, #tpu.memory_space<vmem>>, vector<4x128xf32>
      tpu.vector_store %arg6[%c0_138, %c0_139], %274 {strides = array<i32>} : memref<4x128xf32, #tpu.memory_space<vmem>>, vector<4x128xf32>,
    } else {
    }
    return
  }
  func.func @transform_0(%arg0: i32, %arg1: i32) -> (i32, i32, i32) {
    %c0_i32 = arith.constant 0 : i32
    %c0_i32_0 = arith.constant 0 : i32
    return %arg0, %arg1, %c0_i32 : i32, i32, i32
  }
  func.func @transform_1(%arg0: i32, %arg1: i32) -> (i32, i32) {
    %c0_i32 = arith.constant 0 : i32
    %c0_i32_0 = arith.constant 0 : i32
    %c0_i32_1 = arith.constant 0 : i32
    return %c0_i32, %c0_i32_0 : i32, i32
  }
  func.func @transform_2(%arg0: i32, %arg1: i32) -> (i32, i32) {
    %c0_i32 = arith.constant 0 : i32
    %c0_i32_0 = arith.constant 0 : i32
    %c0_i32_1 = arith.constant 0 : i32
    return %c0_i32, %c0_i32_0 : i32, i32
  }
  func.func @transform_3(%arg0: i32, %arg1: i32) -> (i32, i32) {
    %c0_i32 = arith.constant 0 : i32
    %c0_i32_0 = arith.constant 0 : i32
    %c0_i32_1 = arith.constant 0 : i32
    return %c0_i32, %c0_i32_0 : i32, i32
  }
  func.func @transform_4(%arg0: i32, %arg1: i32) -> (i32, i32) {
    %c0_i32 = arith.constant 0 : i32
    %c0_i32_0 = arith.constant 0 : i32
    return %arg0, %c0_i32 : i32, i32
  }
}

</mosaic_0001>

<bundles_post_ra>
// kernel: tpu_custom_call.1
= control target key start
LH: loop header
LB: loop body
LE: loop exit
PB: predicated region body
PF: predicated region fallthrough
CT: control target
= control target key end

     0   :  { %s6686_s0 = inlined_call_operand.hbm [shape: f32[4,16,16], index: 0, kind: input, shape index: {}]   ;;  %s6687_s1 = inlined_call_operand.hbm [shape: f32[16,512], index: 1, kind: input, shape index: {}]   ;;  %s6688_s2 = inlined_call_operand.hbm [shape: f32[128,512], index: 2, kind: input, shape index: {}]   ;;  %s6689_s3 = inlined_call_operand.hbm [shape: f32[1,512], index: 3, kind: input, shape index: {}]   ;;  %s6690_s4 = inlined_call_operand.hbm [shape: f32[4,128], index: 4, kind: output, shape index: {}]  }
   0x1   :  { %6703 = sst [smem:[#allocation19_spill]] %s6690_s4 }
   0x2   :  { %9 = vsyncpa [#allocation6], 0 }
   0x3   :  { %11 = vsyncpa [#allocation6 + $0x1], 0 }
   0x4   :  { %12 = vsyncpa [#allocation9], 0 }
   0x5   :  { %13 = vsyncpa [#allocation12], 0 }
   0x6   :  { %14 = vsyncpa [#allocation7], 0  ;;  %s5717_s15 = smov 0   ;;  %s5719_s16 = smov 0  }
   0x7   :  { %s5721_s17 = smov 0   ;;  %s5723_s18 = smov 0  }
   0x8   :  { %s5725_s19 = smov 0   ;;  %s5727_s20 = smov 0  }
   0x9 LB: > { %s6696_s21 = sadd.s32 4294967295, %s5676_s20   ;;  %p48_p0 = scmp.ne.s32.totalorder %s5664_s17, %s5660_s16  ;;  %s5676_s20 = sphi %s5727_s20, %s20_s20   ;;  %s5672_s19 = sphi %s5725_s19, %s6731_s19   ;;  %s5668_s18 = sphi %s5723_s18, %s6730_s18   ;;  %s5664_s17 = sphi %s5721_s17, %s6729_s17   ;;  %s5660_s16 = sphi %s5719_s16, %s6728_s16   ;;  %s5656_s15 = sphi %s5717_s15, %s6727_s15  }
   0xa   : > { %p49_p1 = scmp.eq.s32.totalorder %s5676_s20, 0  ;;  %p54_p2 = scmp.ne.s32.totalorder %s5660_s16, %s5656_s15 }
   0xb   : > { %p5752_p3 = scmp.eq.s32.totalorder %s6696_s21, 0  ;;  %p3738_p4 = scmp.ge.s32.totalorder %s5676_s20, 1 }
   0xc   : > { %p50_p5 = por %p49_p1, %p48_p0  ;;  %p154_p6 = scmp.lt.s32.totalorder %s5676_s20, 3 }
   0xd   : > { %s6704_s22 = scalar_select %p5752_p3, 1, 0 }
   0xe   : > { %p5760_p7 = por %p5752_p3, %p54_p2  ;;  %p5764_p8 = pnand %p3738_p4, %p154_p6 }
   0xf   : > { %s5678_s25 = smov [#allocation8]   ;;  %p5343_p11 = scmp.lt.s32.totalorder %s5676_s20, 2 }
  0x10   : > { %s6705_s23 = scalar_select %p5760_p7, 1, 0 }
  0x11   : > { %s6706_s24 = scalar_select %p5764_p8, 1, 0 }
  0x12   : > { %s166_s26 = sshll.u32 %s5678_s25, 4  ;;  %p5326_p9 = pneg %p5764_p8  ;;  %s167_s26 = int_to_ptr.vmem [resolvable:$true] %s166_s26 }
  0x13   : > { %p5777_p12 = pnand %p5343_p11, %p50_p5  ;;  %s5474_s5 = scalar_lea.hbm %s6687_s1, 1024 }
  0x14   : > { %p5772_p10 = pnand %p5326_p9, %p5752_p3  ;;  %p5475_p13 = scmp.ne.s32.totalorder %s6687_s1, %s5474_s5 }
  0x15   : > { %s6708_s28 = scalar_select %p5777_p12, 1, 0 }
  0x16   : > { %p5789_p0 = pneg %p5772_p10  ;;  %p5481_p4 = scmp.lt.u32.totalorder %s5474_s5, %s6687_s1 }
  0x18   : > { %p5477_p1 = pnand %p5789_p0, %p5475_p13 }
  0x1a   : > { %p5478_p2 = pneg %p5477_p1 }
  0x1c   : > { %p5483_p5 = pnand %p5481_p4, %p5478_p2 }
  0x1e   : > { %5486 = shalt.err (!%p5483_p5)
}
  0x1f   : > { %s5487_s11 = scalar_lea.vmem %s167_s26, 1024  ;;  %p5495_p3 = scmp.lt.s32.totalorder %s167_s26, %s167_s26 }
  0x20   : > { %p5488_p6 = scmp.ne.s32.totalorder %s167_s26, %s5487_s11  ;;  %p5496_p7 = scmp.lt.s32.totalorder %s5487_s11, %s5487_s11 }
  0x22   : > { %p5490_p9 = pnand %p5488_p6, %p5789_p0  ;;  %p5497_p8 = por %p5496_p7, %p5495_p3 }
  0x24   : > { %p5491_p11 = pneg %p5490_p9 }
  0x26   : > { %p5498_p12 = pnand %p5497_p8, %p5491_p11 }
  0x28   : > { %5501 = shalt.err (!%p5498_p12)
}
  0x29   : > { %s5679_s12 = smov 512   ;;  %s5680_s13 = smov 32  }
  0x2a   : > { %5329 = dma.hbm_to_vmem [thread:$0]  (!%p5772_p10), %s6687_s1, 1024, %s167_s26, [#allocation9], %s5679_s12, %s5679_s12, %s5680_s13  }
  0x2b   : > { %s5681_s25 = smov [#allocation10]   ;;  %s5682_s30 = smov [#allocation11]  }
  0x2c   : > { %s179_s29 = sshll.u32 %s5681_s25, 4  ;;  %s193_s5 = sshll.u32 %s5682_s30, 4  ;;  %s180_s29 = int_to_ptr.vmem [resolvable:$true] %s179_s29  ;;  %s194_s5 = int_to_ptr.vmem [resolvable:$true] %s193_s5 }
  0x2d   : > { %s5502_s9 = scalar_lea.hbm %s6688_s2, 8192 }
  0x2e   : > { %p5503_p3 = scmp.ne.s32.totalorder %s6688_s2, %s5502_s9  ;;  %p5509_p12 = scmp.lt.u32.totalorder %s5502_s9, %s6688_s2 }
  0x30   : > { %p5505_p7 = pnand %p5503_p3, %p5789_p0 }
  0x32   : > { %p5506_p8 = pneg %p5505_p7 }
  0x34   : > { %p5511_p13 = pnand %p5509_p12, %p5506_p8 }
  0x36   : > { %5514 = shalt.err (!%p5511_p13)
}
  0x37   : > { %s5515_s26 = scalar_lea.vmem %s180_s29, 8192  ;;  %p5523_p5 = scmp.lt.s32.totalorder %s180_s29, %s180_s29 }
  0x38   : > { %p5516_p1 = scmp.ne.s32.totalorder %s180_s29, %s5515_s26  ;;  %p5524_p6 = scmp.lt.s32.totalorder %s5515_s26, %s5515_s26 }
  0x3a   : > { %p5518_p2 = pnand %p5516_p1, %p5789_p0  ;;  %p5525_p9 = por %p5524_p6, %p5523_p5 }
  0x3c   : > { %p5519_p4 = pneg %p5518_p2 }
  0x3e   : > { %p5526_p11 = pnand %p5525_p9, %p5519_p4 }
  0x40   : > { %5529 = shalt.err (!%p5526_p11)
}
  0x41   : > { %5332 = dma.hbm_to_vmem [thread:$0]  (!%p5772_p10), %s6688_s2, 8192, %s180_s29, [#allocation9], %s5679_s12, %s5679_s12, %s5680_s13  }
  0x42   : > { %s5530_s25 = scalar_lea.hbm %s6689_s3, 64 }
  0x43   : > { %p5531_p3 = scmp.ne.s32.totalorder %s6689_s3, %s5530_s25  ;;  %p5537_p12 = scmp.lt.u32.totalorder %s5530_s25, %s6689_s3 }
  0x45   : > { %p5533_p7 = pnand %p5531_p3, %p5789_p0 }
  0x47   : > { %p5534_p8 = pneg %p5533_p7 }
  0x49   : > { %p5539_p13 = pnand %p5537_p12, %p5534_p8 }
  0x4b   : > { %5542 = shalt.err (!%p5539_p13)
}
  0x4c   : > { %s5543_s10 = scalar_lea.vmem %s194_s5, 64  ;;  %p5551_p5 = scmp.lt.s32.totalorder %s194_s5, %s194_s5 }
  0x4d   : > { %p5544_p1 = scmp.ne.s32.totalorder %s194_s5, %s5543_s10  ;;  %p5552_p6 = scmp.lt.s32.totalorder %s5543_s10, %s5543_s10 }
  0x4f   : > { %p5546_p2 = pnand %p5544_p1, %p5789_p0  ;;  %p5553_p9 = por %p5552_p6, %p5551_p5 }
  0x51   : > { %p5547_p4 = pneg %p5546_p2 }
  0x53   : > { %p5554_p11 = pnand %p5553_p9, %p5547_p4 }
  0x55   : > { %5557 = shalt.err (!%p5554_p11)
}
  0x56   : > { %5335 = dma.hbm_to_vmem [thread:$0]  (!%p5772_p10), %s6689_s3, 64, %s194_s5, [#allocation12]  }
  0x57   : > { %s41_s8 = sadd.s32 1, %s5664_s17  ;;  %s29_s29 = sadd.s32 1, %s5672_s19 }
  0x58   : > { %s204_s11 = sand.u32 1, %s5664_s17   ;;  %p30_p0 = scmp.ge.s32.totalorder %s29_s29, 2 }
  0x59   : > { %s3743_s26 = sshll.u32 %s204_s11, 5  ;;  %s3744_s14 = sshll.u32 %s5672_s19, 7 }
  0x5a   : > { %s6733_s29 = smov (%p30_p0, %s29_s29), 0  ;;  %s5850_s4 = scalar_lea.hbm %s6686_s0, %s3744_s14 }
  0x5b   : > { %s37_s5 = ssub.s32 %s5672_s19, %s6733_s29  ;;  %s208_s21 = scalar_lea.vmem [#allocation5], %s3743_s26 }
  0x5c   : > { %s217_s25 = sshll.u32 %s208_s21, 4  ;;  %p39_p10 = scmp.eq.s32.totalorder %s37_s5, 0  ;;  %s5854_s25 = int_to_ptr.vmem [resolvable:$true] %s217_s25 }
  0x5d   : > { %s5859_s6 = scalar_lea.sflag [#allocation6], %s204_s11  ;;  %s5558_s7 = scalar_lea.hbm %s5850_s4, 512 }
  0x5e   : > { %s5857_s30 = scalar_select %p39_p10, %s5664_s17, %s41_s8  }
  0x5f   : > { %p5559_p3 = scmp.ne.s32.totalorder %s5850_s4, %s5558_s7  ;;  %p6710_p7 = scmp.ne.s32.totalorder %s6708_s28, 0 }
  0x60   : > { %s5563_s12 = scalar_lea.hbm %s6686_s0, 1024  ;;  %p5564_p1 = scmp.lt.u32.totalorder %s5850_s4, %s6686_s0 }
  0x61   : > { %p5560_p8 = pneg %p6710_p7  ;;  %p5565_p2 = scmp.lt.u32.totalorder %s5563_s12, %s5558_s7 }
  0x62   : > { %p5567_p5 = scmp.lt.u32.totalorder %s5558_s7, %s5850_s4 }
  0x63   : > { %p5561_p12 = pnand %p5560_p8, %p5559_p3  ;;  %p5566_p4 = por %p5565_p2, %p5564_p1 }
  0x65   : > { %p5562_p13 = pneg %p5561_p12  ;;  %p5568_p6 = por %p5567_p5, %p5566_p4 }
  0x67   : > { %p5569_p9 = pnand %p5568_p6, %p5562_p13 }
  0x69   : > { %5572 = shalt.err (!%p5569_p9)
}
  0x6a   : > { %s5573_s8 = scalar_lea.vmem %s5854_s25, 512  ;;  %s5683_s11 = smov [#allocation5]  }
  0x6b   : > { %p5574_p11 = scmp.ne.s32.totalorder %s5854_s25, %s5573_s8  ;;  %s5578_s14 = sshll.u32 %s5683_s11, 4  ;;  %s5579_s14 = int_to_ptr.vmem [resolvable:$false] %s5578_s14 }
  0x6c   : > { %s5580_s27 = scalar_lea.vmem %s5579_s14, 1024  ;;  %p5581_p3 = scmp.lt.s32.totalorder %s5854_s25, %s5579_s14 }
  0x6d   : > { %p5576_p0 = pnand %p5574_p11, %p5560_p8  ;;  %p5582_p12 = scmp.lt.s32.totalorder %s5580_s27, %s5573_s8 }
  0x6f   : > { %p5577_p10 = pneg %p5576_p0  ;;  %p5583_p1 = por %p5582_p12, %p5581_p3 }
  0x71   : > { %p5584_p2 = pnand %p5583_p1, %p5577_p10 }
  0x73   : > { %5587 = shalt.err (!%p5584_p2)
}
  0x74   : > { %s5684_s15 = smov 256   ;;  %s5685_s5 = smov 128  }
  0x75   : > { %s5686_s21 = smov 8   ;;  %p6711_p8 = scmp.ne.s32.totalorder %s6706_s24, 0 }
  0x76   : > { %5339 = dma.hbm_to_vmem [thread:$0]  (!%p6710_p7), %s5850_s4, 512, %s5854_s25, %s5859_s6, %s5684_s15, %s5685_s5, %s5686_s21  }
  0x77   : > { %229 = sbr.rel (%p6711_p8) target bundleno = 2437 (0x985), region = 36 }
  0x7e   : > { %s231_s7 = sand.u32 1, %s5660_s16   ;;  %p6712_p13 = scmp.ne.s32.totalorder %s6705_s23, 0 }
  0x7f   : > { %s3746_s9 = sshll.u32 %s231_s7, 5  ;;  %s232_s10 = scalar_lea.sflag [#allocation6], %s231_s7 }
  0x80   : > { %s5890_s12 = scalar_lea.vmem [#allocation5], %s3746_s9 }
  0x81   : > { %5639 = dma.done.wait (%p6712_p13), %s232_s10, 512  }
  0x82   : > { %5641 = vsyncadd (%p6712_p13), %s232_s10, 4294966784  ;;  %p6713_p4 = scmp.ne.s32.totalorder %s6704_s22, 0 }
  0x84   : > { %5643 = dma.done.wait (%p6713_p4), [#allocation9], 9216  }
  0x85   : > { %5645 = vsyncadd (%p6713_p4), [#allocation9], 4294958080 }
  0x86   : > { %5647 = dma.done.wait (%p6713_p4), [#allocation12], 64  }
  0x87   : > { %5649 = vsyncadd (%p6713_p4), [#allocation12], 4294967232  ;;  %p3750_p7 = scmp.ne.s32.totalorder %s5668_s18, 0 }
  0x88   : > { %v5687_v0 = vmov (!%p3750_p7), 0.0  }
  0x89   : > { %271 = sbr.rel (%p3750_p7) target bundleno = 144 (0x90), region = 56  ;;  %272 = vst [vmem:[#allocation3] sm:$0xf] (!%p3750_p7), %v5687_v0  ;;  %273 = vst [vmem:[#allocation4] sm:$0xf] (!%p3750_p7), %v5687_v0 }
  0x90 PF: > { %v275_v1 = vld [vmem:[#allocation8 + $0x8] sm:$0xff]  ;;  %v277_v3 = vld [vmem:[#allocation8 + $0x18] sm:$0xff]  ;;  %v274_v6 = vld [vmem:[#allocation8] sm:$0xff]  ;;  %v6700_v8 = vmov 0.0   ;;  %vm313_vm0 = vcmask 1041409   ;;  %vm316_vm1 = vcmask 1042434  }
  0x91   : > { %v279_v2 = vld [vmem:[#allocation8 + $0x28] sm:$0xff]  ;;  %v281_v5 = vld [vmem:[#allocation8 + $0x38] sm:$0xff]  ;;  %v278_v7 = vld [vmem:[#allocation8 + $0x20] sm:$0xff]  ;;  %388 = vmatprep.mubr.f32.mxu0 %v6700_v8  ;;  %459 = vmatprep.mubr.f32.mxu1 %v6700_v8  ;;  %vm319_vm2 = vcmask 1043459   ;;  %vm321_vm3 = vcmask 130048   ;;  %vm5690_vm4 = vmmov 0  }
  0x92   : > { %v5905_v4 = vpack.c.bf16 %v279_v2, %v275_v1  ;;  %v5909_v9 = vpack.c.bf16 %v281_v5, %v277_v3  ;;  %v5911_v10 = vpack.c.bf16 %v278_v7, %v274_v6  ;;  %v276_v11 = vld [vmem:[#allocation8 + $0x10] sm:$0xff]  ;;  %v304_v13 = vld [vmem:[%s5890_s12] sm:$0x1]  ;;  %v305_v15 = vld [vmem:[%s5890_s12 + $0x8] sm:$0x1]  ;;  %p3767_p5 = scmp.ne.s32.totalorder %s5668_s18, 1 }
  0x93   : > { %v280_v12 = vld [vmem:[#allocation8 + $0x30] sm:$0xff]  ;;  %v307_v17 = vld [vmem:[%s5890_s12 + $0x18] sm:$0x1]  ;;  %v312_v18 = vrot.slane %v305_v15, 7  ;;  %v476_v21 = vld [vmem:[%s5890_s12 + $0x1] sm:$0x1] }
  0x94   : > { %4605 = vmatprep.subr.bf16.mxu0 %v5905_v4  ;;  %v5915_v14 = vpack.c.bf16 %v280_v12, %v276_v11  ;;  %v306_v16 = vld [vmem:[%s5890_s12 + $0x10] sm:$0x1]  ;;  %4609 = vmatprep.subr.bf16.mxu1 %v5909_v9  ;;  %v318_v20 = vrot.slane %v307_v17, 5  ;;  %v477_v22 = vld [vmem:[%s5890_s12 + $0x9] sm:$0x1] }
  0x95   : > { %4607 = vmatpush1.bf16.msra.mxu0 %v5911_v10  ;;  %v315_v19 = vrot.slane %v306_v16, 6  ;;  %v478_v23 = vld [vmem:[%s5890_s12 + $0x11] sm:$0x1]  ;;  %v479_v24 = vld [vmem:[%s5890_s12 + $0x19] sm:$0x1]  ;;  %v314_v25 = vsel %vm313_vm0, %v312_v18, %v304_v13  ;;  %v484_v26 = vrot.slane %v477_v22, 7 }
  0x96   : > { %4611 = vmatpush1.bf16.msra.mxu1 %v5915_v14  ;;  %4613 = vmatprep.subr.bf16.mxu0 %v5905_v4  ;;  %v486_v27 = vrot.slane %v478_v23, 6  ;;  %v488_v28 = vrot.slane %v479_v24, 5  ;;  %v645_v29 = vld [vmem:[%s5890_s12 + $0x2] sm:$0x1]  ;;  %v646_v31 = vld [vmem:[%s5890_s12 + $0xa] sm:$0x1] }
  0x97   : > { %4617 = vmatprep.subr.bf16.mxu1 %v5909_v9  ;;  %v317_v30 = vsel %vm316_vm1, %v315_v19, %v314_v25  ;;  %v647_v32 = vld [vmem:[%s5890_s12 + $0x12] sm:$0x1]  ;;  %v648_v33 = vld [vmem:[%s5890_s12 + $0x1a] sm:$0x1]  ;;  %v485_v35 = vsel %vm313_vm0, %v484_v26, %v476_v21  ;;  %v653_v36 = vrot.slane %v646_v31, 7  ;;  %v1660_v31 = vld [vmem:[#allocation10 + $0x8] sm:$0xff] }
  0x98   : > { %v320_v34 = vsel %vm319_vm2, %v318_v20, %v317_v30  ;;  %v655_v37 = vrot.slane %v647_v32, 6  ;;  %v815_v38 = vld [vmem:[%s5890_s12 + $0xb] sm:$0x1]  ;;  %v487_v39 = vsel %vm316_vm1, %v486_v27, %v485_v35  ;;  %v814_v40 = vld [vmem:[%s5890_s12 + $0x3] sm:$0x1]  ;;  %v657_v45 = vrot.slane %v648_v33, 5 }
  0x99   : > { %3751 = vmatmul.mubr.msk.f32.vlgmr.msra.gmra.mrb[0].mxu0 %vm321_vm3, %v320_v34  ;;  %3752 = vmatmul.mubr.msk.f32.vlgmr.msra.gmra.mrb[0].mxu1 %vm321_vm3, %v320_v34  ;;  %v816_v41 = vld [vmem:[%s5890_s12 + $0x13] sm:$0x1]  ;;  %v822_v42 = vrot.slane %v815_v38, 7  ;;  %v489_v43 = vsel %vm319_vm2, %v488_v28, %v487_v39  ;;  %v654_v44 = vsel %vm313_vm0, %v653_v36, %v645_v29  ;;  %v984_v46 = vld [vmem:[%s5890_s12 + $0xc] sm:$0x1]  ;;  %v1659_v35 = vld [vmem:[#allocation10] sm:$0xff] }
  0x9a   : > { %4615 = vmatpush1.bf16.msra.mxu0 %v5911_v10  ;;  %4619 = vmatpush1.bf16.msra.mxu1 %v5915_v14  ;;  %v656_v47 = vsel %vm316_vm1, %v655_v37, %v654_v44  ;;  %v817_v48 = vld [vmem:[%s5890_s12 + $0x1b] sm:$0x1]  ;;  %v824_v49 = vrot.slane %v816_v41, 6  ;;  %v985_v51 = vld [vmem:[%s5890_s12 + $0x14] sm:$0x1]  ;;  %v991_v52 = vrot.slane %v984_v46, 7 }
  0x9b   : > { %556 = vmatprep.mubr.f32.mxu0 %v6700_v8  ;;  %627 = vmatprep.mubr.f32.mxu1 %v6700_v8  ;;  %v823_v50 = vsel %vm313_vm0, %v822_v42, %v814_v40  ;;  %v983_v53 = vld [vmem:[%s5890_s12 + $0x4] sm:$0x1]  ;;  %v1153_v54 = vld [vmem:[%s5890_s12 + $0xd] sm:$0x1]  ;;  %v658_v55 = vsel %vm319_vm2, %v657_v45, %v656_v47  ;;  %v826_v56 = vrot.slane %v817_v48, 5  ;;  %v993_v59 = vrot.slane %v985_v51, 6 }
  0x9c   : > { %4621 = vmatprep.subr.bf16.mxu0 %v5905_v4  ;;  %4625 = vmatprep.subr.bf16.mxu1 %v5909_v9  ;;  %v825_v57 = vsel %vm316_vm1, %v824_v49, %v823_v50  ;;  %v986_v58 = vld [vmem:[%s5890_s12 + $0x1c] sm:$0x1]  ;;  %v992_v60 = vsel %vm313_vm0, %v991_v52, %v983_v53  ;;  %v1154_v61 = vld [vmem:[%s5890_s12 + $0x15] sm:$0x1]  ;;  %v1160_v62 = vrot.slane %v1153_v54, 7  ;;  %v1663_v32 = vld [vmem:[#allocation10 + $0x28] sm:$0xff] }
  0x9d   : > { %3753 = vmatmul.mubr.msk.f32.vlgmr.msra.gmra.mrb[2].mxu0 %vm321_vm3, %v489_v43  ;;  %3754 = vmatmul.mubr.msk.f32.vlgmr.msra.gmra.mrb[2].mxu1 %vm321_vm3, %v489_v43  ;;  %v1152_v63 = vld [vmem:[%s5890_s12 + $0x5] sm:$0x1]  ;;  %v1322_v0 = vld [vmem:[%s5890_s12 + $0xe] sm:$0x1]  ;;  %v827_v1 = vsel %vm319_vm2, %v826_v56, %v825_v57  ;;  %v995_v2 = vrot.slane %v986_v58, 5  ;;  %v994_v3 = vsel %vm316_vm1, %v993_v59, %v992_v60  ;;  %v1162_v6 = vrot.slane %v1154_v61, 6 }
  0x9e   : > { %4623 = vmatpush1.bf16.msra.mxu0 %v5911_v10  ;;  %4627 = vmatpush1.bf16.msra.mxu1 %v5915_v14  ;;  %v1155_v5 = vld [vmem:[%s5890_s12 + $0x1d] sm:$0x1]  ;;  %v1161_v7 = vsel %vm313_vm0, %v1160_v62, %v1152_v63  ;;  %v1323_v11 = vld [vmem:[%s5890_s12 + $0x16] sm:$0x1]  ;;  %v1329_v12 = vrot.slane %v1322_v0, 7  ;;  %v1662_v37 = vld [vmem:[#allocation10 + $0x20] sm:$0xff]  ;;  %v6024_v40 = vpack.c.bf16 %v1663_v32, %v1660_v31 }
  0x9f   : > { %725 = vmatprep.mubr.f32.mxu0 %v6700_v8  ;;  %796 = vmatprep.mubr.f32.mxu1 %v6700_v8  ;;  %v1321_v13 = vld [vmem:[%s5890_s12 + $0x6] sm:$0x1]  ;;  %v1491_v15 = vld [vmem:[%s5890_s12 + $0xf] sm:$0x1]  ;;  %v996_v16 = vsel %vm319_vm2, %v995_v2, %v994_v3  ;;  %v1164_v17 = vrot.slane %v1155_v5, 5  ;;  %v1163_v18 = vsel %vm316_vm1, %v1162_v6, %v1161_v7  ;;  %v1331_v20 = vrot.slane %v1323_v11, 6 }
  0xa0   : > { %4629 = vmatprep.subr.bf16.mxu0 %v5905_v4  ;;  %4633 = vmatprep.subr.bf16.mxu1 %v5909_v9  ;;  %v1324_v19 = vld [vmem:[%s5890_s12 + $0x1e] sm:$0x1]  ;;  %v1330_v21 = vsel %vm313_vm0, %v1329_v12, %v1321_v13  ;;  %v1492_v22 = vld [vmem:[%s5890_s12 + $0x17] sm:$0x1]  ;;  %v1498_v23 = vrot.slane %v1491_v15, 7  ;;  %v1666_v41 = vld [vmem:[#allocation10 + $0x48] sm:$0xff]  ;;  %v6031_v44 = vpack.c.bf16 %v1662_v37, %v1659_v35 }
  0xa1   : > { %3755 = vmatmul.mubr.msk.f32.vlgmr.msra.gmra.mrb[4].mxu0 %vm321_vm3, %v658_v55  ;;  %3756 = vmatmul.mubr.msk.f32.vlgmr.msra.gmra.mrb[4].mxu1 %vm321_vm3, %v658_v55  ;;  %v1490_v24 = vld [vmem:[%s5890_s12 + $0x7] sm:$0x1]  ;;  %v1165_v25 = vsel %vm319_vm2, %v1164_v17, %v1163_v18  ;;  %v1333_v26 = vrot.slane %v1324_v19, 5  ;;  %v1332_v27 = vsel %vm316_vm1, %v1331_v20, %v1330_v21  ;;  %v1493_v28 = vld [vmem:[%s5890_s12 + $0x1f] sm:$0x1]  ;;  %v1500_v29 = vrot.slane %v1492_v22, 6 }
  0xa2   : > { %4631 = vmatpush1.bf16.msra.mxu0 %v5911_v10  ;;  %4635 = vmatpush1.bf16.msra.mxu1 %v5915_v14  ;;  %v1499_v30 = vsel %vm313_vm0, %v1498_v23, %v1490_v24  ;;  %v1502_v34 = vrot.slane %v1493_v28, 5  ;;  %v1661_v38 = vld [vmem:[#allocation10 + $0x10] sm:$0xff]  ;;  %v1669_v42 = vld [vmem:[#allocation10 + $0x68] sm:$0xff]  ;;  %v1668_v46 = vld [vmem:[#allocation10 + $0x60] sm:$0xff] }
  0xa3   : > { %894 = vmatprep.mubr.f32.mxu0 %v6700_v8  ;;  %965 = vmatprep.mubr.f32.mxu1 %v6700_v8  ;;  %v1334_v33 = vsel %vm319_vm2, %v1333_v26, %v1332_v27  ;;  %v1501_v36 = vsel %vm316_vm1, %v1500_v29, %v1499_v30  ;;  %v1664_v39 = vld [vmem:[#allocation10 + $0x30] sm:$0xff]  ;;  %v1675_v49 = vld [vmem:[#allocation10 + $0xa8] sm:$0xff]  ;;  %v1671_v52 = vld [vmem:[#allocation10 + $0x80] sm:$0xff] }
  0xa4   : > { %4637 = vmatprep.subr.bf16.mxu0 %v5905_v4  ;;  %4641 = vmatprep.subr.bf16.mxu1 %v5909_v9  ;;  %v1503_v43 = vsel %vm319_vm2, %v1502_v34, %v1501_v36  ;;  %v6033_v45 = vpack.c.bf16 %v1664_v39, %v1661_v38  ;;  %v1667_v47 = vld [vmem:[#allocation10 + $0x50] sm:$0xff]  ;;  %v1674_v54 = vld [vmem:[#allocation10 + $0xa0] sm:$0xff]  ;;  %v1678_v57 = vld [vmem:[#allocation10 + $0xc8] sm:$0xff] }
  0xa5   : > { %3757 = vmatmul.mubr.msk.f32.vlgmr.msra.gmra.mrb[6].mxu0 %vm321_vm3, %v827_v1  ;;  %3758 = vmatmul.mubr.msk.f32.vlgmr.msra.gmra.mrb[6].mxu1 %vm321_vm3, %v827_v1  ;;  %v1670_v48 = vld [vmem:[#allocation10 + $0x70] sm:$0xff]  ;;  %v1681_v58 = vld [vmem:[#allocation10 + $0xe8] sm:$0xff]  ;;  %v6058_v59 = vpack.c.bf16 %v1674_v54, %v1671_v52  ;;  %v1677_v61 = vld [vmem:[#allocation10 + $0xc0] sm:$0xff] }
  0xa6   : > { %4639 = vmatpush1.bf16.msra.mxu0 %v5911_v10  ;;  %4643 = vmatpush1.bf16.msra.mxu1 %v5915_v14  ;;  %v6047_v51 = vpack.c.bf16 %v1670_v48, %v1667_v47  ;;  %v1673_v55 = vld [vmem:[#allocation10 + $0x90] sm:$0xff]  ;;  %v6064_v62 = vpack.c.bf16 %v1681_v58, %v1678_v57  ;;  %v1680_v63 = vld [vmem:[#allocation10 + $0xe0] sm:$0xff]  ;;  %v1684_v2 = vld [vmem:[#allocation10 + $0x108] sm:$0xff] }
  0xa7   : > { %1063 = vmatprep.mubr.f32.mxu0 %v6700_v8  ;;  %1134 = vmatprep.mubr.f32.mxu1 %v6700_v8  ;;  %v1676_v56 = vld [vmem:[#allocation10 + $0xb0] sm:$0xff]  ;;  %v1687_v3 = vld [vmem:[#allocation10 + $0x128] sm:$0xff]  ;;  %v6068_v5 = vpack.c.bf16 %v1680_v63, %v1677_v61  ;;  %v1683_v7 = vld [vmem:[#allocation10 + $0x100] sm:$0xff] }
  0xa8   : > { %4645 = vmatprep.subr.bf16.mxu0 %v5905_v4  ;;  %4649 = vmatprep.subr.bf16.mxu1 %v5909_v9  ;;  %v6060_v60 = vpack.c.bf16 %v1676_v56, %v1673_v55  ;;  %v1679_v0 = vld [vmem:[#allocation10 + $0xd0] sm:$0xff]  ;;  %v6074_v11 = vpack.c.bf16 %v1687_v3, %v1684_v2  ;;  %v1686_v12 = vld [vmem:[#allocation10 + $0x120] sm:$0xff]  ;;  %v1693_v17 = vld [vmem:[#allocation10 + $0x168] sm:$0xff] }
  0xa9   : > { %3759 = vmatmul.mubr.msk.f32.vlgmr.msra.gmra.mrb[8].mxu0 %vm321_vm3, %v996_v16  ;;  %3760 = vmatmul.mubr.msk.f32.vlgmr.msra.gmra.mrb[8].mxu1 %vm321_vm3, %v996_v16  ;;  %v1682_v1 = vld [vmem:[#allocation10 + $0xf0] sm:$0xff]  ;;  %v1690_v16 = vld [vmem:[#allocation10 + $0x148] sm:$0xff]  ;;  %v6078_v18 = vpack.c.bf16 %v1686_v12, %v1683_v7  ;;  %v1689_v20 = vld [vmem:[#allocation10 + $0x140] sm:$0xff] }
  0xaa   : > { %4647 = vmatpush1.bf16.msra.mxu0 %v5911_v10  ;;  %4651 = vmatpush1.bf16.msra.mxu1 %v5915_v14  ;;  %v6070_v6 = vpack.c.bf16 %v1682_v1, %v1679_v0  ;;  %v1685_v13 = vld [vmem:[#allocation10 + $0x110] sm:$0xff]  ;;  %v6084_v21 = vpack.c.bf16 %v1693_v17, %v1690_v16  ;;  %v1692_v22 = vld [vmem:[#allocation10 + $0x160] sm:$0xff]  ;;  %v1699_v26 = vld [vmem:[#allocation10 + $0x1a8] sm:$0xff] }
  0xab   : > { %1232 = vmatprep.mubr.f32.mxu0 %v6700_v8  ;;  %1303 = vmatprep.mubr.f32.mxu1 %v6700_v8  ;;  %v1688_v15 = vld [vmem:[#allocation10 + $0x130] sm:$0xff]  ;;  %v6088_v27 = vpack.c.bf16 %v1692_v22, %v1689_v20  ;;  %v1695_v29 = vld [vmem:[#allocation10 + $0x180] sm:$0xff]  ;;  %v1702_v34 = vld [vmem:[#allocation10 + $0x1c8] sm:$0xff] }
  0xac   : > { %4653 = vmatprep.subr.bf16.mxu0 %v5905_v4  ;;  %4657 = vmatprep.subr.bf16.mxu1 %v5909_v9  ;;  %v6080_v19 = vpack.c.bf16 %v1688_v15, %v1685_v13  ;;  %v1691_v23 = vld [vmem:[#allocation10 + $0x150] sm:$0xff]  ;;  %v1698_v31 = vld [vmem:[#allocation10 + $0x1a0] sm:$0xff]  ;;  %v1705_v35 = vld [vmem:[#allocation10 + $0x1e8] sm:$0xff] }
  0xad   : > { %3761 = vmatmul.mubr.msk.f32.vlgmr.msra.gmra.mrb[10].mxu0 %vm321_vm3, %v1165_v25  ;;  %3762 = vmatmul.mubr.msk.f32.vlgmr.msra.gmra.mrb[10].mxu1 %vm321_vm3, %v1165_v25  ;;  %v1694_v24 = vld [vmem:[#allocation10 + $0x170] sm:$0xff]  ;;  %v1696_v25 = vld [vmem:[#allocation10 + $0x188] sm:$0xff]  ;;  %v6098_v36 = vpack.c.bf16 %v1698_v31, %v1695_v29  ;;  %v1701_v38 = vld [vmem:[#allocation10 + $0x1c0] sm:$0xff]  ;;  %v6104_v39 = vpack.c.bf16 %v1705_v35, %v1702_v34 }
  0xae   : > { %4655 = vmatpush1.bf16.msra.mxu0 %v5911_v10  ;;  %4659 = vmatpush1.bf16.msra.mxu1 %v5915_v14  ;;  %v6090_v28 = vpack.c.bf16 %v1694_v24, %v1691_v23  ;;  %v6094_v30 = vpack.c.bf16 %v1699_v26, %v1696_v25  ;;  %v1697_v32 = vld [vmem:[#allocation10 + $0x190] sm:$0xff]  ;;  %v1707_v47 = vld [vmem:[#allocation10 + $0x18] sm:$0xff]  ;;  %v284_v24 = vlaneseq  ;;  %v282_v31 = vld [vmem:[#allocation11] sm:$0xf] }
  0xaf   : > { %1401 = vmatprep.mubr.f32.mxu0 %v6700_v8  ;;  %1472 = vmatprep.mubr.f32.mxu1 %v6700_v8  ;;  %v1708_v48 = vld [vmem:[#allocation10 + $0x38] sm:$0xff] }
  0xb0   : > { %4661 = vmatprep.subr.bf16.mxu0 %v5905_v4  ;;  %4665 = vmatprep.subr.bf16.mxu1 %v5909_v9  ;;  %v1665_v4 = vld [vmem:[#allocation10 + $0x40] sm:$0xff]  ;;  %v6037_v9 = vpack.c.bf16 %v1669_v42, %v1666_v41  ;;  %v1703_v42 = vld [vmem:[#allocation10 + $0x1d0] sm:$0xff]  ;;  %v1709_v52 = vld [vmem:[#allocation10 + $0x58] sm:$0xff]  ;;  %v285_v25 = vshrl.u32 %v284_v24, 7 }
  0xb1   : > { %3763 = vmatmul.mubr.msk.f32.vlgmr.msra.gmra.mrb[12].mxu0 %vm321_vm3, %v1334_v33  ;;  %3764 = vmatmul.mubr.msk.f32.vlgmr.msra.gmra.mrb[12].mxu1 %vm321_vm3, %v1334_v33  ;;  %v6045_v50 = vpack.c.bf16 %v1668_v46, %v1665_v4  ;;  %v1700_v33 = vld [vmem:[#allocation10 + $0x1b0] sm:$0xff]  ;;  %v1704_v41 = vld [vmem:[#allocation10 + $0x1e0] sm:$0xff]  ;;  %v1710_v54 = vld [vmem:[#allocation10 + $0x78] sm:$0xff] }
  0xb2   : > { %4663 = vmatpush1.bf16.msra.mxu0 %v5911_v10  ;;  %4667 = vmatpush1.bf16.msra.mxu1 %v5915_v14  ;;  %v6698_v10 = vmov 0.0|0.0   ;;  %v1672_v14 = vld [vmem:[#allocation10 + $0x88] sm:$0xff]  ;;  %v6100_v37 = vpack.c.bf16 %v1700_v33, %v1697_v32  ;;  %v6108_v4 = vpack.c.bf16 %v1704_v41, %v1701_v38  ;;  %v6121_v55 = vpack.c.bf16 %v1710_v54, %v1709_v52  ;;  %v1711_v56 = vld [vmem:[#allocation10 + $0x98] sm:$0xff] }
  0xb3   : > { %1570 = vmatprep.mubr.f32.mxu0 %v6700_v8  ;;  %1641 = vmatprep.mubr.f32.mxu1 %v6700_v8  ;;  %v6051_v53 = vpack.c.bf16 %v1675_v49, %v1672_v14  ;;  %v1723_v14 = vld [vmem:[#allocation3] sm:$0xf]  ;;  %v6116_v49 = vpack.c.bf16 %v1708_v48, %v1707_v47  ;;  %v286_v26 = vsub.s32 0, %v285_v25  ;;  %v294_v29 = vsub.s32 2, %v285_v25 }
  0xb4   : > { %4669 = vmatprep.subr.bf16.mxu0 %v6024_v40  ;;  %4700 = vmatprep.subr.bf16.mxu1 %v6698_v10  ;;  %v1712_v57 = vld [vmem:[#allocation10 + $0xb8] sm:$0xff]  ;;  %v290_v32 = vsub.s32 1, %v285_v25  ;;  %v298_v33 = vsub.s32 3, %v285_v25 }
  0xb5   : > { %3765 = vmatmul.mubr.msk.f32.vlgmr.msra.gmra.mrb[14].mxu0 %vm321_vm3, %v1503_v43  ;;  %3766 = vmatmul.mubr.msk.f32.vlgmr.msra.gmra.mrb[14].mxu1 %vm321_vm3, %v1503_v43  ;;  %v1706_v43 = vld [vmem:[#allocation10 + $0x1f0] sm:$0xff]  ;;  %v6130_v58 = vpack.c.bf16 %v1712_v57, %v1711_v56  ;;  %v1713_v61 = vld [vmem:[#allocation10 + $0xd8] sm:$0xff]  ;;  %v6187_v34 = vrot.slane %v282_v31, %v286_v26  ;;  %v6189_v35 = vrot.slane %v282_v31, %v294_v29 }
  0xb6   : > { %4671 = vmatpush1.bf16.msra.mxu0 %v6031_v44  ;;  %4702 = vmatpush3.bf16.msra.mxu1 %v6033_v45  ;;  %v6110_v46 = vpack.c.bf16 %v1706_v43, %v1703_v42  ;;  %v1714_v63 = vld [vmem:[#allocation10 + $0xf8] sm:$0xff]  ;;  %v6191_v38 = vrot.slane %v282_v31, %v290_v32  ;;  %v6193_v41 = vrot.slane %v282_v31, %v298_v33 }
  0xb7   : > { %4673 = vmatprep.subr.bf16.mxu0 %v6037_v9  ;;  %4703 = vmatprep.subr.bf16.mxu1 %v6698_v10  ;;  %v6136_v0 = vpack.c.bf16 %v1714_v63, %v1713_v61  ;;  %v1715_v1 = vld [vmem:[#allocation10 + $0x118] sm:$0xff] }
  0xb8   : > { %1791 = vmatprep.mubr.f32.mxu0 %v6700_v8  ;;  %4076 = vmatprep.mubr.msk.f32.mxu1 %vm5690_vm4, %v6700_v8  ;;  %v1716_v2 = vld [vmem:[#allocation10 + $0x138] sm:$0xff] }
  0xb9   : > { %v6142_v3 = vpack.c.bf16 %v1716_v2, %v1715_v1  ;;  %v1717_v7 = vld [vmem:[#allocation10 + $0x158] sm:$0xff] }
  0xba   : > { %4675 = vmatpush1.bf16.msra.mxu0 %v6045_v50  ;;  %4705 = vmatpush3.bf16.msra.mxu1 %v6047_v51  ;;  %v1718_v12 = vld [vmem:[#allocation10 + $0x178] sm:$0xff] }
  0xbb   : > { %4677 = vmatprep.subr.bf16.mxu0 %v6051_v53  ;;  %4706 = vmatprep.subr.bf16.mxu1 %v6698_v10  ;;  %v6148_v13 = vpack.c.bf16 %v1718_v12, %v1717_v7  ;;  %v1719_v15 = vld [vmem:[#allocation10 + $0x198] sm:$0xff] }
  0xbc   : > { %v1720_v16 = vld [vmem:[#allocation10 + $0x1b8] sm:$0xff] }
  0xbd   : > { %v6154_v17 = vpack.c.bf16 %v1720_v16, %v1719_v15  ;;  %v1721_v20 = vld [vmem:[#allocation10 + $0x1d8] sm:$0xff] }
  0xbe   : > { %4679 = vmatpush1.bf16.msra.mxu0 %v6058_v59  ;;  %4708 = vmatpush3.bf16.msra.mxu1 %v6060_v60  ;;  %v1722_v22 = vld [vmem:[#allocation10 + $0x1f8] sm:$0xff] }
  0xbf   : > { %4681 = vmatprep.subr.bf16.mxu0 %v6064_v62  ;;  %4709 = vmatprep.subr.bf16.mxu1 %v6698_v10  ;;  %v6160_v23 = vpack.c.bf16 %v1722_v22, %v1721_v20 }
  0xc2   : > { %4683 = vmatpush1.bf16.msra.mxu0 %v6068_v5  ;;  %4711 = vmatpush3.bf16.msra.mxu1 %v6070_v6 }
  0xc3   : > { %4685 = vmatprep.subr.bf16.mxu0 %v6074_v11  ;;  %4712 = vmatprep.subr.bf16.mxu1 %v6698_v10 }
  0xc6   : > { %4687 = vmatpush1.bf16.msra.mxu0 %v6078_v18  ;;  %4714 = vmatpush3.bf16.msra.mxu1 %v6080_v19 }
  0xc7   : > { %4689 = vmatprep.subr.bf16.mxu0 %v6084_v21  ;;  %4715 = vmatprep.subr.bf16.mxu1 %v6698_v10 }
  0xca   : > { %4691 = vmatpush1.bf16.msra.mxu0 %v6088_v27  ;;  %4717 = vmatpush3.bf16.msra.mxu1 %v6090_v28 }
  0xcb   : > { %4693 = vmatprep.subr.bf16.mxu0 %v6094_v30  ;;  %4718 = vmatprep.subr.bf16.mxu1 %v6698_v10 }
  0xce   : > { %4695 = vmatpush1.bf16.msra.mxu0 %v6098_v36  ;;  %4720 = vmatpush3.bf16.msra.mxu1 %v6100_v37 }
  0xcf   : > { %4697 = vmatprep.subr.bf16.mxu0 %v6104_v39  ;;  %4721 = vmatprep.subr.bf16.mxu1 %v6698_v10 }
  0xd2   : > { %4699 = vmatpush1.bf16.msra.mxu0 %v6108_v4  ;;  %4723 = vmatpush3.bf16.msra.mxu1 %v6110_v46 }
  0xd3   : > { %4724 = vmatprep.subr.bf16.mxu0 %v6698_v10  ;;  %4749 = vmatprep.subr.bf16.mxu1 %v6024_v40 }
  0xd5   : > { %1792 = vmatmul.mubr.f32.vlgmr.msra.gmra.mrb[16].mxu0 %v1723_v14  ;;  %4077 = vmatmul.mubr.f32.vlgmr.msra.gmra.mrb[16].mxu1 %v1723_v14 }
  0xd6   : > { %4726 = vmatpush3.bf16.msra.mxu0 %v6116_v49  ;;  %4111 = vmatprep.mubr.msk.f32.mxu0 %vm5690_vm4, %v6700_v8 }
  0xd7   : > { %4727 = vmatprep.subr.bf16.mxu0 %v6698_v10  ;;  %4751 = vmatpush1.bf16.msra.mxu1 %v6031_v44 }
  0xd8   : > { %4753 = vmatprep.subr.bf16.mxu1 %v6037_v9  ;;  %2029 = vmatprep.mubr.f32.mxu1 %v6700_v8 }
  0xda   : > { %4729 = vmatpush3.bf16.msra.mxu0 %v6121_v55 }
  0xdb   : > { %4730 = vmatprep.subr.bf16.mxu0 %v6698_v10  ;;  %4755 = vmatpush1.bf16.msra.mxu1 %v6045_v50 }
  0xdc   : > { %4757 = vmatprep.subr.bf16.mxu1 %v6051_v53 }
  0xde   : > { %4732 = vmatpush3.bf16.msra.mxu0 %v6130_v58 }
  0xdf   : > { %4733 = vmatprep.subr.bf16.mxu0 %v6698_v10  ;;  %4759 = vmatpush1.bf16.msra.mxu1 %v6058_v59 }
  0xe0   : > { %4761 = vmatprep.subr.bf16.mxu1 %v6064_v62 }
  0xe2   : > { %4735 = vmatpush3.bf16.msra.mxu0 %v6136_v0 }
  0xe3   : > { %4736 = vmatprep.subr.bf16.mxu0 %v6698_v10  ;;  %4763 = vmatpush1.bf16.msra.mxu1 %v6068_v5 }
  0xe4   : > { %4765 = vmatprep.subr.bf16.mxu1 %v6074_v11 }
  0xe6   : > { %4738 = vmatpush3.bf16.msra.mxu0 %v6142_v3 }
  0xe7   : > { %4739 = vmatprep.subr.bf16.mxu0 %v6698_v10  ;;  %4767 = vmatpush1.bf16.msra.mxu1 %v6078_v18 }
  0xe8   : > { %4769 = vmatprep.subr.bf16.mxu1 %v6084_v21 }
  0xea   : > { %4741 = vmatpush3.bf16.msra.mxu0 %v6148_v13 }
  0xeb   : > { %4742 = vmatprep.subr.bf16.mxu0 %v6698_v10  ;;  %4771 = vmatpush1.bf16.msra.mxu1 %v6088_v27 }
  0xec   : > { %4773 = vmatprep.subr.bf16.mxu1 %v6094_v30 }
  0xee   : > { %4744 = vmatpush3.bf16.msra.mxu0 %v6154_v17 }
  0xef   : > { %4745 = vmatprep.subr.bf16.mxu0 %v6698_v10  ;;  %4775 = vmatpush1.bf16.msra.mxu1 %v6098_v36 }
  0xf0   : > { %4777 = vmatprep.subr.bf16.mxu1 %v6104_v39 }
  0xf2   : > { %4747 = vmatpush3.bf16.msra.mxu0 %v6160_v23 }
  0xf3   : > { %4780 = vmatprep.subr.bf16.mxu0 %v6698_v10  ;;  %4779 = vmatpush1.bf16.msra.mxu1 %v6108_v4 }
  0xf4   : > { %4804 = vmatprep.subr.bf16.mxu1 %v6698_v10 }
  0xf5   : > { %4112 = vmatmul.mubr.f32.vlgmr.msra.gmra.mrb[18].mxu0 %v1723_v14 }
  0xf6   : > { %4782 = vmatpush3.bf16.msra.mxu0 %v6033_v45  ;;  %4146 = vmatprep.mubr.msk.f32.mxu0 %vm5690_vm4, %v6700_v8 }
  0xf7   : > { %4783 = vmatprep.subr.bf16.mxu0 %v6698_v10 }
  0xfa   : > { %4785 = vmatpush3.bf16.msra.mxu0 %v6047_v51 }
  0xfb   : > { %4786 = vmatprep.subr.bf16.mxu0 %v6698_v10 }
  0xfe   : > { %4788 = vmatpush3.bf16.msra.mxu0 %v6060_v60 }
  0xff   : > { %4789 = vmatprep.subr.bf16.mxu0 %v6698_v10 }
 0x102   : > { %4791 = vmatpush3.bf16.msra.mxu0 %v6070_v6 }
 0x103   : > { %4792 = vmatprep.subr.bf16.mxu0 %v6698_v10 }
 0x106   : > { %4794 = vmatpush3.bf16.msra.mxu0 %v6080_v19 }
 0x107   : > { %4795 = vmatprep.subr.bf16.mxu0 %v6698_v10 }
 0x10a   : > { %4797 = vmatpush3.bf16.msra.mxu0 %v6090_v28 }
 0x10b   : > { %4798 = vmatprep.subr.bf16.mxu0 %v6698_v10 }
 0x10e   : > { %4800 = vmatpush3.bf16.msra.mxu0 %v6100_v37 }
 0x10f   : > { %4801 = vmatprep.subr.bf16.mxu0 %v6698_v10 }
 0x112   : > { %4803 = vmatpush3.bf16.msra.mxu0 %v6110_v46 }
 0x113   : > { %4829 = vmatprep.subr.bf16.mxu0 %v6024_v40 }
 0x16c   : > { %v390_v42 = vpop.f32.mrb[0].mxu0  ;;  %v461_v43 = vpop.f32.mrb[0].mxu1 }
 0x16d   : > { %v6196_v47 = vadd.f32 %v390_v42, %v6187_v34  ;;  %v392_v48 = vpop.f32.mrb[1].mxu0  ;;  %v462_v14 = vadd.f32 %v461_v43, %v6189_v35  ;;  %v463_v52 = vpop.f32.mrb[1].mxu1 }
 0x16e   : > { %v6200_v54 = vadd.f32 %v392_v48, %v6191_v38  ;;  %v464_v56 = vadd.f32 %v463_v52, %v6193_v41 }
 0x170   : > { %v558_v61 = vpop.f32.mrb[2].mxu0  ;;  %v471_v63 = vcombine.low %v462_v14, %v464_v56  ;;  %v629_v1 = vpop.f32.mrb[2].mxu1 }
 0x171   : > { %v6206_v2 = vadd.f32 %v558_v61, %v6187_v34  ;;  %v560_v7 = vpop.f32.mrb[3].mxu0  ;;  %v630_v12 = vadd.f32 %v629_v1, %v6189_v35  ;;  %v631_v15 = vpop.f32.mrb[3].mxu1 }
 0x172   : > { %v6210_v16 = vadd.f32 %v560_v7, %v6191_v38  ;;  %475 = vst [vmem:[#allocation2 + $0x8] sm:$0xff] %v471_v63  ;;  %v632_v20 = vadd.f32 %v631_v15, %v6193_v41 }
 0x174   : > { %v727_v24 = vpop.f32.mrb[4].mxu0  ;;  %v639_v25 = vcombine.low %v630_v12, %v632_v20  ;;  %v798_v26 = vpop.f32.mrb[4].mxu1 }
 0x175   : > { %v6216_v29 = vadd.f32 %v727_v24, %v6187_v34  ;;  %v729_v31 = vpop.f32.mrb[5].mxu0  ;;  %v799_v32 = vadd.f32 %v798_v26, %v6189_v35  ;;  %v800_v33 = vpop.f32.mrb[5].mxu1 }
 0x176   : > { %v6220_v42 = vadd.f32 %v729_v31, %v6191_v38  ;;  %644 = vst [vmem:[#allocation2 + $0x18] sm:$0xff] %v639_v25  ;;  %v801_v43 = vadd.f32 %v800_v33, %v6193_v41 }
 0x178   : > { %v896_v14 = vpop.f32.mrb[6].mxu0  ;;  %v808_v52 = vcombine.low %v799_v32, %v801_v43  ;;  %v967_v56 = vpop.f32.mrb[6].mxu1 }
 0x179   : > { %v6226_v61 = vadd.f32 %v896_v14, %v6187_v34  ;;  %v898_v63 = vpop.f32.mrb[7].mxu0  ;;  %v968_v1 = vadd.f32 %v967_v56, %v6189_v35  ;;  %v969_v7 = vpop.f32.mrb[7].mxu1 }
 0x17a   : > { %v6230_v12 = vadd.f32 %v898_v63, %v6191_v38  ;;  %813 = vst [vmem:[#allocation2 + $0x28] sm:$0xff] %v808_v52  ;;  %v970_v15 = vadd.f32 %v969_v7, %v6193_v41 }
 0x17c   : > { %v1065_v24 = vpop.f32.mrb[8].mxu0  ;;  %v977_v25 = vcombine.low %v968_v1, %v970_v15  ;;  %v1136_v26 = vpop.f32.mrb[8].mxu1 }
 0x17d   : > { %v6236_v31 = vadd.f32 %v1065_v24, %v6187_v34  ;;  %v1067_v32 = vpop.f32.mrb[9].mxu0  ;;  %v1137_v33 = vadd.f32 %v1136_v26, %v6189_v35  ;;  %v1138_v43 = vpop.f32.mrb[9].mxu1 }
 0x17e   : > { %v6240_v14 = vadd.f32 %v1067_v32, %v6191_v38  ;;  %982 = vst [vmem:[#allocation2 + $0x38] sm:$0xff] %v977_v25  ;;  %v1139_v52 = vadd.f32 %v1138_v43, %v6193_v41 }
 0x180   : > { %v1234_v63 = vpop.f32.mrb[10].mxu0  ;;  %v1146_v7 = vcombine.low %v1137_v33, %v1139_v52  ;;  %v1305_v1 = vpop.f32.mrb[10].mxu1 }
 0x181   : > { %v6246_v15 = vadd.f32 %v1234_v63, %v6187_v34  ;;  %v1236_v24 = vpop.f32.mrb[11].mxu0  ;;  %v1306_v20 = vadd.f32 %v1305_v1, %v6189_v35  ;;  %v1307_v26 = vpop.f32.mrb[11].mxu1 }
 0x182   : > { %v6250_v48 = vadd.f32 %v1236_v24, %v6191_v38  ;;  %1151 = vst [vmem:[#allocation2 + $0x48] sm:$0xff] %v1146_v7  ;;  %v1308_v25 = vadd.f32 %v1307_v26, %v6193_v41 }
 0x184   : > { %6714 = vst [vmem:[#allocation18_spill] sm:$0xff] %v6250_v48  ;;  %v1403_v43 = vpop.f32.mrb[12].mxu0  ;;  %v1315_v56 = vcombine.low %v1306_v20, %v1308_v25  ;;  %v1474_v33 = vpop.f32.mrb[12].mxu1 }
 0x185   : > { %v1404_v52 = vadd.f32 %v1403_v43, %v6187_v34  ;;  %v1405_v63 = vpop.f32.mrb[13].mxu0  ;;  %v1475_v22 = vadd.f32 %v1474_v33, %v6189_v35  ;;  %v1476_v10 = vpop.f32.mrb[13].mxu1 }
 0x186   : > { %v1406_v1 = vadd.f32 %v1405_v63, %v6191_v38  ;;  %1320 = vst [vmem:[#allocation2 + $0x58] sm:$0xff] %v1315_v56  ;;  %v1477_v24 = vadd.f32 %v1476_v10, %v6193_v41 }
 0x188   : > { %v1483_v7 = vcombine.low %v1404_v52, %v1406_v1  ;;  %v1572_v8 = vpop.f32.mrb[14].mxu0  ;;  %v1484_v26 = vcombine.low %v1475_v22, %v1477_v24  ;;  %v1643_v57 = vpop.f32.mrb[14].mxu1 }
 0x189   : > { %v1573_v32 = vadd.f32 %v1572_v8, %v6187_v34  ;;  %v1574_v48 = vpop.f32.mrb[15].mxu0  ;;  %v1644_v20 = vadd.f32 %v1643_v57, %v6189_v35  ;;  %v1645_v25 = vpop.f32.mrb[15].mxu1  ;;  %v6715_v8 = vcombine.low %v6196_v47, %v6200_v54 }
 0x18a   : > { %1488 = vst [vmem:[#allocation2 + $0x60] sm:$0xff] %v1483_v7  ;;  %v1575_v43 = vadd.f32 %v1574_v48, %v6191_v38  ;;  %1489 = vst [vmem:[#allocation2 + $0x68] sm:$0xff] %v1484_v26  ;;  %v1646_v33 = vadd.f32 %v1645_v25, %v6193_v41  ;;  %v1882_v38 = vld [vmem:[#allocation2 + $0xc] sm:$0xf]  ;;  %v1726_v7 = vld [vmem:[#allocation2 + $0x8] sm:$0xf] }
 0x18c   : > { %v1652_v63 = vcombine.low %v1573_v32, %v1575_v43  ;;  %v1653_v56 = vcombine.low %v1644_v20, %v1646_v33 }
 0x18e   : > { %1657 = vst [vmem:[#allocation2 + $0x70] sm:$0xff] %v1652_v63  ;;  %1658 = vst [vmem:[#allocation2 + $0x78] sm:$0xff] %v1653_v56  ;;  %v1724_v63 = vld [vmem:[#allocation4] sm:$0xf] }
 0x1a8   : > { %v1793_v10 = vpop.f32.mrb[16].mxu0  ;;  %v1864_v52 = vpop.f32.mrb[16].mxu1 }
 0x1a9   : > { %v1795_v22 = vpop.f32.mrb[17].mxu0  ;;  %v4078_v1 = vpop.f32.mrb[17].mxu1  ;;  %v1873_v26 = vadd.f32 %v1864_v52, %v1726_v7  ;;  %v6716_v52 = vmov 0.0  }
 0x1aa   : > { %v1870_v24 = vcombine.low %v1793_v10, %v1795_v22 }
 0x1ab   : > { %v1875_v25 = vmul.f32 0.5, %v1873_v26 }
 0x1ac   : > { %v1872_v34 = vadd.f32 %v1870_v24, %v6715_v8 }
 0x1ae   : > { %v1874_v35 = vmul.f32 0.5, %v1872_v34 }
 0x1b0   : > { %5410 = vtanh.f32 %v1874_v35  ;;  %v6717_v35 = vmov 0.0|0.0  }
 0x1ba   : > { %v5411_v57 = vpop.eup %5410 }
 0x1bb   : > { %v1878_v20 = vadd.f32 1.0, %v5411_v57 }
 0x1bd   : > { %v1880_v43 = vmul.f32 0.5, %v1878_v20 }
 0x1bf   : > { %v1956_v33 = vrot.slane %v1880_v43, 4 }
 0x1c1   : > { %v1958_v10 = vmul.f32 %v1956_v33, %v1724_v63  ;;  %v1964_v63 = vld [vmem:[#allocation2 + $0x18] sm:$0xf] }
 0x1c8   : > { %v1949_v48 = vpop.f32.mrb[18].mxu0 }
 0x1c9   : > { %v1953_v41 = vadd.f32 %v1949_v48, %v1882_v38  ;;  %v4113_v32 = vpop.f32.mrb[19].mxu0 }
 0x1ca   : > { %v6718_v32 = vcombine.low %v6206_v2, %v6210_v16 }
 0x1cb   : > { %5412 = vtanh.f32 %v1953_v41 }
 0x1cc   : > { %5414 = vtanh.f32 %v1875_v25 }
 0x1d5   : > { %v5413_v56 = vpop.eup %5412 }
 0x1d6   : > { %v1959_v47 = vmul.f32 %v5413_v56, %v1880_v43  ;;  %v5415_v22 = vpop.eup %5414  ;;  %v2120_v43 = vld [vmem:[#allocation2 + $0x1c] sm:$0xf] }
 0x1d7   : > { %v1879_v1 = vadd.f32 1.0, %v5415_v22 }
 0x1d8   : > { %v6266_v54 = vadd.f32 %v1959_v47, %v1958_v10 }
 0x1d9   : > { %v1881_v24 = vmul.f32 0.5, %v1879_v1 }
 0x1da   : > { %5416 = vtanh.f32 %v6266_v54 }
 0x1e4   : > { %v5417_v8 = vpop.eup %5416 }
 0x1e5   : > { %v1962_v34 = vmul.f32 %v5417_v8, %v1881_v24 }
 0x1e7   : > { %2030 = vmatmul.mubr.f32.vlgmr.msra.gmra.mrb[18].mxu1 %v1962_v34  ;;  %4147 = vmatmul.mubr.f32.vlgmr.msra.gmra.mrb[20].mxu0 %v1962_v34 }
 0x1e8   : > { %4806 = vmatpush3.bf16.msra.mxu1 %v6116_v49  ;;  %4181 = vmatprep.mubr.msk.f32.mxu1 %vm5690_vm4, %v6716_v52 }
 0x1e9   : > { %4807 = vmatprep.subr.bf16.mxu1 %v6717_v35  ;;  %4831 = vmatpush1.bf16.msra.mxu0 %v6031_v44 }
 0x1ea   : > { %4833 = vmatprep.subr.bf16.mxu0 %v6037_v9  ;;  %2267 = vmatprep.mubr.f32.mxu0 %v6716_v52 }
 0x1ec   : > { %4809 = vmatpush3.bf16.msra.mxu1 %v6121_v55 }
 0x1ed   : > { %4810 = vmatprep.subr.bf16.mxu1 %v6717_v35  ;;  %4835 = vmatpush1.bf16.msra.mxu0 %v6045_v50 }
 0x1ee   : > { %4837 = vmatprep.subr.bf16.mxu0 %v6051_v53 }
 0x1f0   : > { %4812 = vmatpush3.bf16.msra.mxu1 %v6130_v58 }
 0x1f1   : > { %4813 = vmatprep.subr.bf16.mxu1 %v6717_v35  ;;  %4839 = vmatpush1.bf16.msra.mxu0 %v6058_v59 }
 0x1f2   : > { %4841 = vmatprep.subr.bf16.mxu0 %v6064_v62 }
 0x1f4   : > { %4815 = vmatpush3.bf16.msra.mxu1 %v6136_v0 }
 0x1f5   : > { %4816 = vmatprep.subr.bf16.mxu1 %v6717_v35  ;;  %4843 = vmatpush1.bf16.msra.mxu0 %v6068_v5 }
 0x1f6   : > { %4845 = vmatprep.subr.bf16.mxu0 %v6074_v11 }
 0x1f8   : > { %4818 = vmatpush3.bf16.msra.mxu1 %v6142_v3 }
 0x1f9   : > { %4819 = vmatprep.subr.bf16.mxu1 %v6717_v35  ;;  %4847 = vmatpush1.bf16.msra.mxu0 %v6078_v18 }
 0x1fa   : > { %4849 = vmatprep.subr.bf16.mxu0 %v6084_v21 }
 0x1fc   : > { %4821 = vmatpush3.bf16.msra.mxu1 %v6148_v13 }
 0x1fd   : > { %4822 = vmatprep.subr.bf16.mxu1 %v6717_v35  ;;  %4851 = vmatpush1.bf16.msra.mxu0 %v6088_v27 }
 0x1fe   : > { %4853 = vmatprep.subr.bf16.mxu0 %v6094_v30 }
 0x200   : > { %4824 = vmatpush3.bf16.msra.mxu1 %v6154_v17 }
 0x201   : > { %4825 = vmatprep.subr.bf16.mxu1 %v6717_v35  ;;  %4855 = vmatpush1.bf16.msra.mxu0 %v6098_v36 }
 0x202   : > { %4857 = vmatprep.subr.bf16.mxu0 %v6104_v39 }
 0x204   : > { %4827 = vmatpush3.bf16.msra.mxu1 %v6160_v23 }
 0x205   : > { %4860 = vmatprep.subr.bf16.mxu1 %v6717_v35  ;;  %4859 = vmatpush1.bf16.msra.mxu0 %v6108_v4 }
 0x206   : > { %4884 = vmatprep.subr.bf16.mxu0 %v6717_v35 }
 0x207   : > { %4182 = vmatmul.mubr.f32.vlgmr.msra.gmra.mrb[20].mxu1 %v1962_v34 }
 0x208   : > { %4862 = vmatpush3.bf16.msra.mxu1 %v6033_v45  ;;  %4216 = vmatprep.mubr.msk.f32.mxu1 %vm5690_vm4, %v6716_v52 }
 0x209   : > { %4863 = vmatprep.subr.bf16.mxu1 %v6717_v35 }
 0x20c   : > { %4865 = vmatpush3.bf16.msra.mxu1 %v6047_v51 }
 0x20d   : > { %4866 = vmatprep.subr.bf16.mxu1 %v6717_v35 }
 0x210   : > { %4868 = vmatpush3.bf16.msra.mxu1 %v6060_v60 }
 0x211   : > { %4869 = vmatprep.subr.bf16.mxu1 %v6717_v35 }
 0x214   : > { %4871 = vmatpush3.bf16.msra.mxu1 %v6070_v6 }
 0x215   : > { %4872 = vmatprep.subr.bf16.mxu1 %v6717_v35 }
 0x218   : > { %4874 = vmatpush3.bf16.msra.mxu1 %v6080_v19 }
 0x219   : > { %4875 = vmatprep.subr.bf16.mxu1 %v6717_v35 }
 0x21c   : > { %4877 = vmatpush3.bf16.msra.mxu1 %v6090_v28 }
 0x21d   : > { %4878 = vmatprep.subr.bf16.mxu1 %v6717_v35 }
 0x220   : > { %4880 = vmatpush3.bf16.msra.mxu1 %v6100_v37 }
 0x221   : > { %4881 = vmatprep.subr.bf16.mxu1 %v6717_v35 }
 0x224   : > { %4883 = vmatpush3.bf16.msra.mxu1 %v6110_v46 }
 0x225   : > { %4909 = vmatprep.subr.bf16.mxu1 %v6024_v40 }
 0x2ba   : > { %v2031_v57 = vpop.f32.mrb[18].mxu1  ;;  %v2102_v38 = vpop.f32.mrb[20].mxu0 }
 0x2bb   : > { %v2033_v48 = vpop.f32.mrb[19].mxu1  ;;  %v4148_v7 = vpop.f32.mrb[21].mxu0  ;;  %v2111_v47 = vadd.f32 %v2102_v38, %v1964_v63 }
 0x2bc   : > { %v2108_v41 = vcombine.low %v2031_v57, %v2033_v48 }
 0x2bd   : > { %v2113_v1 = vmul.f32 0.5, %v2111_v47  ;;  %v2358_v47 = vld [vmem:[#allocation2 + $0x2c] sm:$0xf] }
 0x2be   : > { %v2110_v26 = vadd.f32 %v2108_v41, %v6718_v32 }
 0x2c0   : > { %v2112_v20 = vmul.f32 0.5, %v2110_v26 }
 0x2c2   : > { %5418 = vtanh.f32 %v2112_v20 }
 0x2cc   : > { %v5419_v25 = vpop.eup %5418 }
 0x2cd   : > { %v2116_v22 = vadd.f32 1.0, %v5419_v25 }
 0x2cf   : > { %v2118_v24 = vmul.f32 0.5, %v2116_v22 }
 0x2d1   : > { %v2194_v8 = vrot.slane %v2118_v24, 4 }
 0x2d3   : > { %v2196_v57 = vmul.f32 %v2194_v8, %v6266_v54 }
 0x2da   : > { %v2187_v33 = vpop.f32.mrb[20].mxu1 }
 0x2db   : > { %v2191_v56 = vadd.f32 %v2187_v33, %v2120_v43  ;;  %v4183_v10 = vpop.f32.mrb[21].mxu1  ;;  %v6719_v33 = vcombine.low %v6216_v29, %v6220_v42 }
 0x2dd   : > { %5420 = vtanh.f32 %v2191_v56 }
 0x2de   : > { %5422 = vtanh.f32 %v2113_v1  ;;  %v2202_v1 = vld [vmem:[#allocation2 + $0x28] sm:$0xf] }
 0x2e7   : > { %v5421_v34 = vpop.eup %5420 }
 0x2e8   : > { %v2197_v2 = vmul.f32 %v5421_v34, %v2118_v24  ;;  %v5423_v48 = vpop.eup %5422 }
 0x2e9   : > { %v2117_v7 = vadd.f32 1.0, %v5423_v48 }
 0x2ea   : > { %v6326_v16 = vadd.f32 %v2197_v2, %v2196_v57 }
 0x2eb   : > { %v2119_v41 = vmul.f32 0.5, %v2117_v7 }
 0x2ec   : > { %5424 = vtanh.f32 %v6326_v16 }
 0x2f6   : > { %v5425_v32 = vpop.eup %5424 }
 0x2f7   : > { %v2200_v26 = vmul.f32 %v5425_v32, %v2119_v41 }
 0x2f9   : > { %2268 = vmatmul.mubr.f32.vlgmr.msra.gmra.mrb[22].mxu0 %v2200_v26  ;;  %4217 = vmatmul.mubr.f32.vlgmr.msra.gmra.mrb[22].mxu1 %v2200_v26 }
 0x2fa   : > { %4886 = vmatpush3.bf16.msra.mxu0 %v6116_v49  ;;  %4251 = vmatprep.mubr.msk.f32.mxu0 %vm5690_vm4, %v6716_v52 }
 0x2fb   : > { %4887 = vmatprep.subr.bf16.mxu0 %v6717_v35  ;;  %4911 = vmatpush1.bf16.msra.mxu1 %v6031_v44 }
 0x2fc   : > { %4913 = vmatprep.subr.bf16.mxu1 %v6037_v9  ;;  %2505 = vmatprep.mubr.f32.mxu1 %v6716_v52 }
 0x2fe   : > { %4889 = vmatpush3.bf16.msra.mxu0 %v6121_v55 }
 0x2ff   : > { %4890 = vmatprep.subr.bf16.mxu0 %v6717_v35  ;;  %4915 = vmatpush1.bf16.msra.mxu1 %v6045_v50 }
 0x300   : > { %4917 = vmatprep.subr.bf16.mxu1 %v6051_v53 }
 0x302   : > { %4892 = vmatpush3.bf16.msra.mxu0 %v6130_v58 }
 0x303   : > { %4893 = vmatprep.subr.bf16.mxu0 %v6717_v35  ;;  %4919 = vmatpush1.bf16.msra.mxu1 %v6058_v59 }
 0x304   : > { %4921 = vmatprep.subr.bf16.mxu1 %v6064_v62 }
 0x306   : > { %4895 = vmatpush3.bf16.msra.mxu0 %v6136_v0 }
 0x307   : > { %4896 = vmatprep.subr.bf16.mxu0 %v6717_v35  ;;  %4923 = vmatpush1.bf16.msra.mxu1 %v6068_v5 }
 0x308   : > { %4925 = vmatprep.subr.bf16.mxu1 %v6074_v11 }
 0x30a   : > { %4898 = vmatpush3.bf16.msra.mxu0 %v6142_v3 }
 0x30b   : > { %4899 = vmatprep.subr.bf16.mxu0 %v6717_v35  ;;  %4927 = vmatpush1.bf16.msra.mxu1 %v6078_v18 }
 0x30c   : > { %4929 = vmatprep.subr.bf16.mxu1 %v6084_v21 }
 0x30e   : > { %4901 = vmatpush3.bf16.msra.mxu0 %v6148_v13 }
 0x30f   : > { %4902 = vmatprep.subr.bf16.mxu0 %v6717_v35  ;;  %4931 = vmatpush1.bf16.msra.mxu1 %v6088_v27 }
 0x310   : > { %4933 = vmatprep.subr.bf16.mxu1 %v6094_v30 }
 0x312   : > { %4904 = vmatpush3.bf16.msra.mxu0 %v6154_v17 }
 0x313   : > { %4905 = vmatprep.subr.bf16.mxu0 %v6717_v35  ;;  %4935 = vmatpush1.bf16.msra.mxu1 %v6098_v36 }
 0x314   : > { %4937 = vmatprep.subr.bf16.mxu1 %v6104_v39 }
 0x316   : > { %4907 = vmatpush3.bf16.msra.mxu0 %v6160_v23 }
 0x317   : > { %4940 = vmatprep.subr.bf16.mxu0 %v6717_v35  ;;  %4939 = vmatpush1.bf16.msra.mxu1 %v6108_v4 }
 0x318   : > { %4964 = vmatprep.subr.bf16.mxu1 %v6717_v35 }
 0x319   : > { %4252 = vmatmul.mubr.f32.vlgmr.msra.gmra.mrb[24].mxu0 %v2200_v26 }
 0x31a   : > { %4942 = vmatpush3.bf16.msra.mxu0 %v6033_v45  ;;  %4286 = vmatprep.mubr.msk.f32.mxu0 %vm5690_vm4, %v6716_v52 }
 0x31b   : > { %4943 = vmatprep.subr.bf16.mxu0 %v6717_v35 }
 0x31e   : > { %4945 = vmatpush3.bf16.msra.mxu0 %v6047_v51 }
 0x31f   : > { %4946 = vmatprep.subr.bf16.mxu0 %v6717_v35 }
 0x322   : > { %4948 = vmatpush3.bf16.msra.mxu0 %v6060_v60 }
 0x323   : > { %4949 = vmatprep.subr.bf16.mxu0 %v6717_v35 }
 0x326   : > { %4951 = vmatpush3.bf16.msra.mxu0 %v6070_v6 }
 0x327   : > { %4952 = vmatprep.subr.bf16.mxu0 %v6717_v35 }
 0x32a   : > { %4954 = vmatpush3.bf16.msra.mxu0 %v6080_v19 }
 0x32b   : > { %4955 = vmatprep.subr.bf16.mxu0 %v6717_v35 }
 0x32e   : > { %4957 = vmatpush3.bf16.msra.mxu0 %v6090_v28 }
 0x32f   : > { %4958 = vmatprep.subr.bf16.mxu0 %v6717_v35 }
 0x332   : > { %4960 = vmatpush3.bf16.msra.mxu0 %v6100_v37 }
 0x333   : > { %4961 = vmatprep.subr.bf16.mxu0 %v6717_v35 }
 0x336   : > { %4963 = vmatpush3.bf16.msra.mxu0 %v6110_v46 }
 0x337   : > { %4989 = vmatprep.subr.bf16.mxu0 %v6024_v40 }
 0x3cc   : > { %v2269_v54 = vpop.f32.mrb[22].mxu0  ;;  %v2340_v38 = vpop.f32.mrb[22].mxu1 }
 0x3cd   : > { %v2271_v20 = vpop.f32.mrb[23].mxu0  ;;  %v4218_v25 = vpop.f32.mrb[23].mxu1  ;;  %v2349_v34 = vadd.f32 %v2340_v38, %v2202_v1 }
 0x3ce   : > { %v2346_v43 = vcombine.low %v2269_v54, %v2271_v20 }
 0x3cf   : > { %v2351_v2 = vmul.f32 0.5, %v2349_v34  ;;  %v2440_v34 = vld [vmem:[#allocation2 + $0x38] sm:$0xf] }
 0x3d0   : > { %v2348_v63 = vadd.f32 %v2346_v43, %v6719_v33 }
 0x3d2   : > { %v2350_v56 = vmul.f32 0.5, %v2348_v63 }
 0x3d4   : > { %5426 = vtanh.f32 %v2350_v56 }
 0x3de   : > { %v5427_v10 = vpop.eup %5426 }
 0x3df   : > { %v2354_v57 = vadd.f32 1.0, %v5427_v10  ;;  %v6720_v10 = vcombine.low %v6226_v61, %v6230_v12 }
 0x3e1   : > { %v2356_v48 = vmul.f32 0.5, %v2354_v57 }
 0x3e3   : > { %v2432_v7 = vrot.slane %v2356_v48, 4 }
 0x3e5   : > { %v2434_v32 = vmul.f32 %v2432_v7, %v6326_v16 }
 0x3ec   : > { %v2425_v22 = vpop.f32.mrb[24].mxu0 }
 0x3ed   : > { %v2429_v24 = vadd.f32 %v2425_v22, %v2358_v47  ;;  %v4253_v8 = vpop.f32.mrb[25].mxu0 }
 0x3ef   : > { %5428 = vtanh.f32 %v2429_v24  ;;  %v2596_v24 = vld [vmem:[#allocation2 + $0x3c] sm:$0xf] }
 0x3f0   : > { %5430 = vtanh.f32 %v2351_v2 }
 0x3f9   : > { %v5429_v41 = vpop.eup %5428 }
 0x3fa   : > { %v2435_v29 = vmul.f32 %v5429_v41, %v2356_v48  ;;  %v5431_v26 = vpop.eup %5430 }
 0x3fb   : > { %v2355_v54 = vadd.f32 1.0, %v5431_v26 }
 0x3fc   : > { %v6386_v42 = vadd.f32 %v2435_v29, %v2434_v32 }
 0x3fd   : > { %v2357_v20 = vmul.f32 0.5, %v2355_v54 }
 0x3fe   : > { %5432 = vtanh.f32 %v6386_v42 }
 0x408   : > { %v5433_v25 = vpop.eup %5432 }
 0x409   : > { %v2438_v43 = vmul.f32 %v5433_v25, %v2357_v20 }
 0x40b   : > { %2506 = vmatmul.mubr.f32.vlgmr.msra.gmra.mrb[24].mxu1 %v2438_v43  ;;  %4287 = vmatmul.mubr.f32.vlgmr.msra.gmra.mrb[26].mxu0 %v2438_v43 }
 0x40c   : > { %4966 = vmatpush3.bf16.msra.mxu1 %v6116_v49  ;;  %4321 = vmatprep.mubr.msk.f32.mxu1 %vm5690_vm4, %v6716_v52 }
 0x40d   : > { %4967 = vmatprep.subr.bf16.mxu1 %v6717_v35  ;;  %4991 = vmatpush1.bf16.msra.mxu0 %v6031_v44 }
 0x40e   : > { %4993 = vmatprep.subr.bf16.mxu0 %v6037_v9  ;;  %2743 = vmatprep.mubr.f32.mxu0 %v6716_v52 }
 0x410   : > { %4969 = vmatpush3.bf16.msra.mxu1 %v6121_v55 }
 0x411   : > { %4970 = vmatprep.subr.bf16.mxu1 %v6717_v35  ;;  %4995 = vmatpush1.bf16.msra.mxu0 %v6045_v50 }
 0x412   : > { %4997 = vmatprep.subr.bf16.mxu0 %v6051_v53 }
 0x414   : > { %4972 = vmatpush3.bf16.msra.mxu1 %v6130_v58 }
 0x415   : > { %4973 = vmatprep.subr.bf16.mxu1 %v6717_v35  ;;  %4999 = vmatpush1.bf16.msra.mxu0 %v6058_v59 }
 0x416   : > { %5001 = vmatprep.subr.bf16.mxu0 %v6064_v62 }
 0x418   : > { %4975 = vmatpush3.bf16.msra.mxu1 %v6136_v0 }
 0x419   : > { %4976 = vmatprep.subr.bf16.mxu1 %v6717_v35  ;;  %5003 = vmatpush1.bf16.msra.mxu0 %v6068_v5 }
 0x41a   : > { %5005 = vmatprep.subr.bf16.mxu0 %v6074_v11 }
 0x41c   : > { %4978 = vmatpush3.bf16.msra.mxu1 %v6142_v3 }
 0x41d   : > { %4979 = vmatprep.subr.bf16.mxu1 %v6717_v35  ;;  %5007 = vmatpush1.bf16.msra.mxu0 %v6078_v18 }
 0x41e   : > { %5009 = vmatprep.subr.bf16.mxu0 %v6084_v21 }
 0x420   : > { %4981 = vmatpush3.bf16.msra.mxu1 %v6148_v13 }
 0x421   : > { %4982 = vmatprep.subr.bf16.mxu1 %v6717_v35  ;;  %5011 = vmatpush1.bf16.msra.mxu0 %v6088_v27 }
 0x422   : > { %5013 = vmatprep.subr.bf16.mxu0 %v6094_v30 }
 0x424   : > { %4984 = vmatpush3.bf16.msra.mxu1 %v6154_v17 }
 0x425   : > { %4985 = vmatprep.subr.bf16.mxu1 %v6717_v35  ;;  %5015 = vmatpush1.bf16.msra.mxu0 %v6098_v36 }
 0x426   : > { %5017 = vmatprep.subr.bf16.mxu0 %v6104_v39 }
 0x428   : > { %4987 = vmatpush3.bf16.msra.mxu1 %v6160_v23 }
 0x429   : > { %5020 = vmatprep.subr.bf16.mxu1 %v6717_v35  ;;  %5019 = vmatpush1.bf16.msra.mxu0 %v6108_v4 }
 0x42a   : > { %5044 = vmatprep.subr.bf16.mxu0 %v6717_v35 }
 0x42b   : > { %4322 = vmatmul.mubr.f32.vlgmr.msra.gmra.mrb[26].mxu1 %v2438_v43 }
 0x42c   : > { %5022 = vmatpush3.bf16.msra.mxu1 %v6033_v45  ;;  %4356 = vmatprep.mubr.msk.f32.mxu1 %vm5690_vm4, %v6716_v52 }
 0x42d   : > { %5023 = vmatprep.subr.bf16.mxu1 %v6717_v35 }
 0x430   : > { %5025 = vmatpush3.bf16.msra.mxu1 %v6047_v51 }
 0x431   : > { %5026 = vmatprep.subr.bf16.mxu1 %v6717_v35 }
 0x434   : > { %5028 = vmatpush3.bf16.msra.mxu1 %v6060_v60 }
 0x435   : > { %5029 = vmatprep.subr.bf16.mxu1 %v6717_v35 }
 0x438   : > { %5031 = vmatpush3.bf16.msra.mxu1 %v6070_v6 }
 0x439   : > { %5032 = vmatprep.subr.bf16.mxu1 %v6717_v35 }
 0x43c   : > { %5034 = vmatpush3.bf16.msra.mxu1 %v6080_v19 }
 0x43d   : > { %5035 = vmatprep.subr.bf16.mxu1 %v6717_v35 }
 0x440   : > { %5037 = vmatpush3.bf16.msra.mxu1 %v6090_v28 }
 0x441   : > { %5038 = vmatprep.subr.bf16.mxu1 %v6717_v35 }
 0x444   : > { %5040 = vmatpush3.bf16.msra.mxu1 %v6100_v37 }
 0x445   : > { %5041 = vmatprep.subr.bf16.mxu1 %v6717_v35 }
 0x448   : > { %5043 = vmatpush3.bf16.msra.mxu1 %v6110_v46 }
 0x449   : > { %5069 = vmatprep.subr.bf16.mxu1 %v6024_v40 }
 0x4de   : > { %v2507_v16 = vpop.f32.mrb[24].mxu1  ;;  %v2578_v38 = vpop.f32.mrb[26].mxu0 }
 0x4df   : > { %v2509_v33 = vpop.f32.mrb[25].mxu1  ;;  %v4288_v63 = vpop.f32.mrb[27].mxu0  ;;  %v2587_v48 = vadd.f32 %v2578_v38, %v2440_v34 }
 0x4e0   : > { %v2584_v56 = vcombine.low %v2507_v16, %v2509_v33 }
 0x4e1   : > { %v2589_v41 = vmul.f32 0.5, %v2587_v48 }
 0x4e2   : > { %v2586_v47 = vadd.f32 %v2584_v56, %v6720_v10 }
 0x4e4   : > { %v2588_v22 = vmul.f32 0.5, %v2586_v47  ;;  %v6721_v47 = vcombine.low %v6236_v31, %v6240_v14 }
 0x4e6   : > { %5434 = vtanh.f32 %v2588_v22 }
 0x4f0   : > { %v5435_v1 = vpop.eup %5434 }
 0x4f1   : > { %v2592_v7 = vadd.f32 1.0, %v5435_v1 }
 0x4f3   : > { %v2594_v32 = vmul.f32 0.5, %v2592_v7 }
 0x4f5   : > { %v2670_v29 = vrot.slane %v2594_v32, 4 }
 0x4f7   : > { %v2672_v54 = vmul.f32 %v2670_v29, %v6386_v42 }
 0x4fe   : > { %v2663_v8 = vpop.f32.mrb[26].mxu1 }
 0x4ff   : > { %v2667_v57 = vadd.f32 %v2663_v8, %v2596_v24  ;;  %v4323_v2 = vpop.f32.mrb[27].mxu1  ;;  %v2834_v8 = vld [vmem:[#allocation2 + $0x4c] sm:$0xf] }
 0x501   : > { %5436 = vtanh.f32 %v2667_v57  ;;  %v2678_v57 = vld [vmem:[#allocation2 + $0x48] sm:$0xf] }
 0x502   : > { %5438 = vtanh.f32 %v2589_v41 }
 0x50b   : > { %v5437_v26 = vpop.eup %5436 }
 0x50c   : > { %v2673_v61 = vmul.f32 %v5437_v26, %v2594_v32  ;;  %v5439_v20 = vpop.eup %5438 }
 0x50d   : > { %v2593_v25 = vadd.f32 1.0, %v5439_v20 }
 0x50e   : > { %v6446_v12 = vadd.f32 %v2673_v61, %v2672_v54 }
 0x50f   : > { %v2595_v43 = vmul.f32 0.5, %v2593_v25 }
 0x510   : > { %5440 = vtanh.f32 %v6446_v12 }
 0x51a   : > { %v5441_v16 = vpop.eup %5440 }
 0x51b   : > { %v2676_v33 = vmul.f32 %v5441_v16, %v2595_v43 }
 0x51d   : > { %2744 = vmatmul.mubr.f32.vlgmr.msra.gmra.mrb[28].mxu0 %v2676_v33  ;;  %4357 = vmatmul.mubr.f32.vlgmr.msra.gmra.mrb[28].mxu1 %v2676_v33 }
 0x51e   : > { %5046 = vmatpush3.bf16.msra.mxu0 %v6116_v49  ;;  %4391 = vmatprep.mubr.msk.f32.mxu0 %vm5690_vm4, %v6716_v52 }
 0x51f   : > { %5047 = vmatprep.subr.bf16.mxu0 %v6717_v35  ;;  %5071 = vmatpush1.bf16.msra.mxu1 %v6031_v44 }
 0x520   : > { %5073 = vmatprep.subr.bf16.mxu1 %v6037_v9  ;;  %2981 = vmatprep.mubr.f32.mxu1 %v6716_v52 }
 0x522   : > { %5049 = vmatpush3.bf16.msra.mxu0 %v6121_v55 }
 0x523   : > { %5050 = vmatprep.subr.bf16.mxu0 %v6717_v35  ;;  %5075 = vmatpush1.bf16.msra.mxu1 %v6045_v50 }
 0x524   : > { %5077 = vmatprep.subr.bf16.mxu1 %v6051_v53 }
 0x526   : > { %5052 = vmatpush3.bf16.msra.mxu0 %v6130_v58 }
 0x527   : > { %5053 = vmatprep.subr.bf16.mxu0 %v6717_v35  ;;  %5079 = vmatpush1.bf16.msra.mxu1 %v6058_v59 }
 0x528   : > { %5081 = vmatprep.subr.bf16.mxu1 %v6064_v62 }
 0x52a   : > { %5055 = vmatpush3.bf16.msra.mxu0 %v6136_v0 }
 0x52b   : > { %5056 = vmatprep.subr.bf16.mxu0 %v6717_v35  ;;  %5083 = vmatpush1.bf16.msra.mxu1 %v6068_v5 }
 0x52c   : > { %5085 = vmatprep.subr.bf16.mxu1 %v6074_v11 }
 0x52e   : > { %5058 = vmatpush3.bf16.msra.mxu0 %v6142_v3 }
 0x52f   : > { %5059 = vmatprep.subr.bf16.mxu0 %v6717_v35  ;;  %5087 = vmatpush1.bf16.msra.mxu1 %v6078_v18 }
 0x530   : > { %5089 = vmatprep.subr.bf16.mxu1 %v6084_v21 }
 0x532   : > { %5061 = vmatpush3.bf16.msra.mxu0 %v6148_v13 }
 0x533   : > { %5062 = vmatprep.subr.bf16.mxu0 %v6717_v35  ;;  %5091 = vmatpush1.bf16.msra.mxu1 %v6088_v27 }
 0x534   : > { %5093 = vmatprep.subr.bf16.mxu1 %v6094_v30 }
 0x536   : > { %5064 = vmatpush3.bf16.msra.mxu0 %v6154_v17 }
 0x537   : > { %5065 = vmatprep.subr.bf16.mxu0 %v6717_v35  ;;  %5095 = vmatpush1.bf16.msra.mxu1 %v6098_v36 }
 0x538   : > { %5097 = vmatprep.subr.bf16.mxu1 %v6104_v39 }
 0x53a   : > { %5067 = vmatpush3.bf16.msra.mxu0 %v6160_v23 }
 0x53b   : > { %5100 = vmatprep.subr.bf16.mxu0 %v6717_v35  ;;  %5099 = vmatpush1.bf16.msra.mxu1 %v6108_v4 }
 0x53c   : > { %5124 = vmatprep.subr.bf16.mxu1 %v6717_v35 }
 0x53d   : > { %4392 = vmatmul.mubr.f32.vlgmr.msra.gmra.mrb[30].mxu0 %v2676_v33 }
 0x53e   : > { %5102 = vmatpush3.bf16.msra.mxu0 %v6033_v45  ;;  %4426 = vmatprep.mubr.msk.f32.mxu0 %vm5690_vm4, %v6716_v52 }
 0x53f   : > { %5103 = vmatprep.subr.bf16.mxu0 %v6717_v35 }
 0x542   : > { %5105 = vmatpush3.bf16.msra.mxu0 %v6047_v51 }
 0x543   : > { %5106 = vmatprep.subr.bf16.mxu0 %v6717_v35 }
 0x546   : > { %5108 = vmatpush3.bf16.msra.mxu0 %v6060_v60 }
 0x547   : > { %5109 = vmatprep.subr.bf16.mxu0 %v6717_v35 }
 0x54a   : > { %5111 = vmatpush3.bf16.msra.mxu0 %v6070_v6 }
 0x54b   : > { %5112 = vmatprep.subr.bf16.mxu0 %v6717_v35 }
 0x54e   : > { %5114 = vmatpush3.bf16.msra.mxu0 %v6080_v19 }
 0x54f   : > { %5115 = vmatprep.subr.bf16.mxu0 %v6717_v35 }
 0x552   : > { %5117 = vmatpush3.bf16.msra.mxu0 %v6090_v28 }
 0x553   : > { %5118 = vmatprep.subr.bf16.mxu0 %v6717_v35 }
 0x556   : > { %5120 = vmatpush3.bf16.msra.mxu0 %v6100_v37 }
 0x557   : > { %5121 = vmatprep.subr.bf16.mxu0 %v6717_v35 }
 0x55a   : > { %5123 = vmatpush3.bf16.msra.mxu0 %v6110_v46 }
 0x55b   : > { %5149 = vmatprep.subr.bf16.mxu0 %v6024_v40 }
 0x5f0   : > { %v2745_v42 = vpop.f32.mrb[28].mxu0  ;;  %v2816_v38 = vpop.f32.mrb[28].mxu1 }
 0x5f1   : > { %v2747_v63 = vpop.f32.mrb[29].mxu0  ;;  %v4358_v56 = vpop.f32.mrb[29].mxu1  ;;  %v2825_v7 = vadd.f32 %v2816_v38, %v2678_v57  ;;  %v2916_v57 = vld [vmem:[#allocation2 + $0x58] sm:$0xf] }
 0x5f2   : > { %v2822_v10 = vcombine.low %v2745_v42, %v2747_v63 }
 0x5f3   : > { %v2827_v32 = vmul.f32 0.5, %v2825_v7 }
 0x5f4   : > { %v2824_v22 = vadd.f32 %v2822_v10, %v6721_v47  ;;  %v6722_v10 = vld [vmem:[#allocation18_spill] sm:$0xff] }
 0x5f5   : > { %v6723_v47 = vcombine.low %v6246_v15, %v6722_v10 }
 0x5f6   : > { %v2826_v1 = vmul.f32 0.5, %v2824_v22 }
 0x5f8   : > { %5442 = vtanh.f32 %v2826_v1 }
 0x602   : > { %v5443_v24 = vpop.eup %5442 }
 0x603   : > { %v2830_v41 = vadd.f32 1.0, %v5443_v24 }
 0x605   : > { %v2832_v29 = vmul.f32 0.5, %v2830_v41 }
 0x607   : > { %v2908_v26 = vrot.slane %v2832_v29, 4 }
 0x609   : > { %v2910_v61 = vmul.f32 %v2908_v26, %v6446_v12 }
 0x610   : > { %v2901_v34 = vpop.f32.mrb[30].mxu0 }
 0x611   : > { %v2905_v2 = vadd.f32 %v2901_v34, %v2834_v8  ;;  %v4393_v48 = vpop.f32.mrb[31].mxu0  ;;  %v3072_v8 = vld [vmem:[#allocation2 + $0x5c] sm:$0xf] }
 0x613   : > { %5444 = vtanh.f32 %v2905_v2 }
 0x614   : > { %5446 = vtanh.f32 %v2827_v32 }
 0x61d   : > { %v5445_v54 = vpop.eup %5444 }
 0x61e   : > { %v2911_v31 = vmul.f32 %v5445_v54, %v2832_v29  ;;  %v5447_v20 = vpop.eup %5446 }
 0x61f   : > { %v2831_v25 = vadd.f32 1.0, %v5447_v20 }
 0x620   : > { %v6506_v14 = vadd.f32 %v2911_v31, %v2910_v61 }
 0x621   : > { %v2833_v43 = vmul.f32 0.5, %v2831_v25 }
 0x622   : > { %5448 = vtanh.f32 %v6506_v14 }
 0x62c   : > { %v5449_v16 = vpop.eup %5448 }
 0x62d   : > { %v2914_v33 = vmul.f32 %v5449_v16, %v2833_v43 }
 0x62f   : > { %2982 = vmatmul.mubr.f32.vlgmr.msra.gmra.mrb[30].mxu1 %v2914_v33  ;;  %4427 = vmatmul.mubr.f32.vlgmr.msra.gmra.mrb[32].mxu0 %v2914_v33 }
 0x630   : > { %5126 = vmatpush3.bf16.msra.mxu1 %v6116_v49  ;;  %4461 = vmatprep.mubr.msk.f32.mxu1 %vm5690_vm4, %v6716_v52 }
 0x631   : > { %5127 = vmatprep.subr.bf16.mxu1 %v6717_v35  ;;  %5151 = vmatpush1.bf16.msra.mxu0 %v6031_v44 }
 0x632   : > { %5153 = vmatprep.subr.bf16.mxu0 %v6037_v9  ;;  %3219 = vmatprep.mubr.f32.mxu0 %v6716_v52 }
 0x634   : > { %5129 = vmatpush3.bf16.msra.mxu1 %v6121_v55 }
 0x635   : > { %5130 = vmatprep.subr.bf16.mxu1 %v6717_v35  ;;  %5155 = vmatpush1.bf16.msra.mxu0 %v6045_v50 }
 0x636   : > { %5157 = vmatprep.subr.bf16.mxu0 %v6051_v53 }
 0x638   : > { %5132 = vmatpush3.bf16.msra.mxu1 %v6130_v58 }
 0x639   : > { %5133 = vmatprep.subr.bf16.mxu1 %v6717_v35  ;;  %5159 = vmatpush1.bf16.msra.mxu0 %v6058_v59 }
 0x63a   : > { %5161 = vmatprep.subr.bf16.mxu0 %v6064_v62 }
 0x63c   : > { %5135 = vmatpush3.bf16.msra.mxu1 %v6136_v0 }
 0x63d   : > { %5136 = vmatprep.subr.bf16.mxu1 %v6717_v35  ;;  %5163 = vmatpush1.bf16.msra.mxu0 %v6068_v5 }
 0x63e   : > { %5165 = vmatprep.subr.bf16.mxu0 %v6074_v11 }
 0x640   : > { %5138 = vmatpush3.bf16.msra.mxu1 %v6142_v3 }
 0x641   : > { %5139 = vmatprep.subr.bf16.mxu1 %v6717_v35  ;;  %5167 = vmatpush1.bf16.msra.mxu0 %v6078_v18 }
 0x642   : > { %5169 = vmatprep.subr.bf16.mxu0 %v6084_v21 }
 0x644   : > { %5141 = vmatpush3.bf16.msra.mxu1 %v6148_v13 }
 0x645   : > { %5142 = vmatprep.subr.bf16.mxu1 %v6717_v35  ;;  %5171 = vmatpush1.bf16.msra.mxu0 %v6088_v27 }
 0x646   : > { %5173 = vmatprep.subr.bf16.mxu0 %v6094_v30 }
 0x648   : > { %5144 = vmatpush3.bf16.msra.mxu1 %v6154_v17 }
 0x649   : > { %5145 = vmatprep.subr.bf16.mxu1 %v6717_v35  ;;  %5175 = vmatpush1.bf16.msra.mxu0 %v6098_v36 }
 0x64a   : > { %5177 = vmatprep.subr.bf16.mxu0 %v6104_v39 }
 0x64c   : > { %5147 = vmatpush3.bf16.msra.mxu1 %v6160_v23 }
 0x64d   : > { %5180 = vmatprep.subr.bf16.mxu1 %v6717_v35  ;;  %5179 = vmatpush1.bf16.msra.mxu0 %v6108_v4 }
 0x64e   : > { %5204 = vmatprep.subr.bf16.mxu0 %v6717_v35 }
 0x64f   : > { %4462 = vmatmul.mubr.f32.vlgmr.msra.gmra.mrb[32].mxu1 %v2914_v33 }
 0x650   : > { %5182 = vmatpush3.bf16.msra.mxu1 %v6033_v45  ;;  %4496 = vmatprep.mubr.msk.f32.mxu1 %vm5690_vm4, %v6716_v52 }
 0x651   : > { %5183 = vmatprep.subr.bf16.mxu1 %v6717_v35 }
 0x654   : > { %5185 = vmatpush3.bf16.msra.mxu1 %v6047_v51 }
 0x655   : > { %5186 = vmatprep.subr.bf16.mxu1 %v6717_v35 }
 0x658   : > { %5188 = vmatpush3.bf16.msra.mxu1 %v6060_v60 }
 0x659   : > { %5189 = vmatprep.subr.bf16.mxu1 %v6717_v35 }
 0x65c   : > { %5191 = vmatpush3.bf16.msra.mxu1 %v6070_v6 }
 0x65d   : > { %5192 = vmatprep.subr.bf16.mxu1 %v6717_v35 }
 0x660   : > { %5194 = vmatpush3.bf16.msra.mxu1 %v6080_v19 }
 0x661   : > { %5195 = vmatprep.subr.bf16.mxu1 %v6717_v35 }
 0x664   : > { %5197 = vmatpush3.bf16.msra.mxu1 %v6090_v28 }
 0x665   : > { %5198 = vmatprep.subr.bf16.mxu1 %v6717_v35 }
 0x668   : > { %5200 = vmatpush3.bf16.msra.mxu1 %v6100_v37 }
 0x669   : > { %5201 = vmatprep.subr.bf16.mxu1 %v6717_v35 }
 0x66c   : > { %5203 = vmatpush3.bf16.msra.mxu1 %v6110_v46 }
 0x66d   : > { %5229 = vmatprep.subr.bf16.mxu1 %v6024_v40 }
 0x702   : > { %v2983_v12 = vpop.f32.mrb[30].mxu1  ;;  %v3054_v42 = vpop.f32.mrb[32].mxu0 }
 0x703   : > { %v2985_v38 = vpop.f32.mrb[31].mxu1  ;;  %v4428_v63 = vpop.f32.mrb[33].mxu0  ;;  %v3063_v7 = vadd.f32 %v3054_v42, %v2916_v57 }
 0x704   : > { %v3060_v56 = vcombine.low %v2983_v12, %v2985_v38  ;;  %v3391_v63 = vld [vmem:[#allocation2 + $0x70] sm:$0xff] }
 0x705   : > { %v3065_v40 = vmul.f32 0.5, %v3063_v7 }
 0x706   : > { %v3062_v22 = vadd.f32 %v3060_v56, %v6723_v47 }
 0x708   : > { %v3064_v1 = vmul.f32 0.5, %v3062_v22  ;;  %v3392_v22 = vld [vmem:[#allocation2 + $0x78] sm:$0xf] }
 0x70a   : > { %5450 = vtanh.f32 %v3064_v1 }
 0x714   : > { %v5451_v24 = vpop.eup %5450 }
 0x715   : > { %v3068_v41 = vadd.f32 1.0, %v5451_v24 }
 0x717   : > { %v3070_v32 = vmul.f32 0.5, %v3068_v41 }
 0x719   : > { %v3146_v29 = vrot.slane %v3070_v32, 4 }
 0x71b   : > { %v3148_v54 = vmul.f32 %v3146_v29, %v6506_v14 }
 0x722   : > { %v3139_v34 = vpop.f32.mrb[32].mxu1 }
 0x723   : > { %v3143_v2 = vadd.f32 %v3139_v34, %v3072_v8  ;;  %v4463_v48 = vpop.f32.mrb[33].mxu1 }
 0x725   : > { %5452 = vtanh.f32 %v3143_v2 }
 0x726   : > { %5454 = vtanh.f32 %v3065_v40 }
 0x72f   : > { %v5453_v26 = vpop.eup %5452 }
 0x730   : > { %v3149_v15 = vmul.f32 %v5453_v26, %v3070_v32  ;;  %v5455_v31 = vpop.eup %5454 }
 0x731   : > { %v3069_v20 = vadd.f32 1.0, %v5455_v31 }
 0x732   : > { %v6566_v61 = vadd.f32 %v3149_v15, %v3148_v54 }
 0x733   : > { %v3071_v25 = vmul.f32 0.5, %v3069_v20 }
 0x734   : > { %5456 = vtanh.f32 %v6566_v61 }
 0x73e   : > { %v5457_v43 = vpop.eup %5456 }
 0x73f   : > { %v3152_v16 = vmul.f32 %v5457_v43, %v3071_v25 }
 0x741   : > { %3220 = vmatmul.mubr.f32.vlgmr.msra.gmra.mrb[34].mxu0 %v3152_v16  ;;  %4497 = vmatmul.mubr.f32.vlgmr.msra.gmra.mrb[34].mxu1 %v3152_v16 }
 0x742   : > { %5206 = vmatpush3.bf16.msra.mxu0 %v6116_v49  ;;  %4531 = vmatprep.mubr.msk.f32.mxu0 %vm5690_vm4, %v6716_v52 }
 0x743   : > { %5207 = vmatprep.subr.bf16.mxu0 %v6717_v35  ;;  %5231 = vmatpush1.bf16.msra.mxu1 %v6031_v44 }
 0x744   : > { %5233 = vmatprep.subr.bf16.mxu1 %v6037_v9  ;;  %3457 = vmatprep.mubr.f32.mxu1 %v6716_v52 }
 0x746   : > { %5209 = vmatpush3.bf16.msra.mxu0 %v6121_v55 }
 0x747   : > { %5210 = vmatprep.subr.bf16.mxu0 %v6717_v35  ;;  %5235 = vmatpush1.bf16.msra.mxu1 %v6045_v50 }
 0x748   : > { %5237 = vmatprep.subr.bf16.mxu1 %v6051_v53  ;;  %v3153_v53 = vld [vmem:[#allocation2 + $0x60] sm:$0xff] }
 0x74a   : > { %5212 = vmatpush3.bf16.msra.mxu0 %v6130_v58 }
 0x74b   : > { %5213 = vmatprep.subr.bf16.mxu0 %v6717_v35  ;;  %5239 = vmatpush1.bf16.msra.mxu1 %v6058_v59 }
 0x74c   : > { %5241 = vmatprep.subr.bf16.mxu1 %v6064_v62 }
 0x74e   : > { %5215 = vmatpush3.bf16.msra.mxu0 %v6136_v0 }
 0x74f   : > { %5216 = vmatprep.subr.bf16.mxu0 %v6717_v35  ;;  %5243 = vmatpush1.bf16.msra.mxu1 %v6068_v5  ;;  %v3310_v5 = vld [vmem:[#allocation2 + $0x6c] sm:$0xf] }
 0x750   : > { %5245 = vmatprep.subr.bf16.mxu1 %v6074_v11  ;;  %v3154_v11 = vld [vmem:[#allocation2 + $0x68] sm:$0xf] }
 0x752   : > { %5218 = vmatpush3.bf16.msra.mxu0 %v6142_v3 }
 0x753   : > { %5219 = vmatprep.subr.bf16.mxu0 %v6717_v35  ;;  %5247 = vmatpush1.bf16.msra.mxu1 %v6078_v18 }
 0x754   : > { %5249 = vmatprep.subr.bf16.mxu1 %v6084_v21 }
 0x756   : > { %5221 = vmatpush3.bf16.msra.mxu0 %v6148_v13 }
 0x757   : > { %5222 = vmatprep.subr.bf16.mxu0 %v6717_v35  ;;  %5251 = vmatpush1.bf16.msra.mxu1 %v6088_v27 }
 0x758   : > { %5253 = vmatprep.subr.bf16.mxu1 %v6094_v30 }
 0x75a   : > { %5224 = vmatpush3.bf16.msra.mxu0 %v6154_v17 }
 0x75b   : > { %5225 = vmatprep.subr.bf16.mxu0 %v6717_v35  ;;  %5255 = vmatpush1.bf16.msra.mxu1 %v6098_v36 }
 0x75c   : > { %5257 = vmatprep.subr.bf16.mxu1 %v6104_v39 }
 0x75e   : > { %5227 = vmatpush3.bf16.msra.mxu0 %v6160_v23 }
 0x75f   : > { %5260 = vmatprep.subr.bf16.mxu0 %v6717_v35  ;;  %5259 = vmatpush1.bf16.msra.mxu1 %v6108_v4 }
 0x760   : > { %5284 = vmatprep.subr.bf16.mxu1 %v6717_v35 }
 0x761   : > { %4532 = vmatmul.mubr.f32.vlgmr.msra.gmra.mrb[36].mxu0 %v3152_v16 }
 0x762   : > { %5262 = vmatpush3.bf16.msra.mxu0 %v6033_v45  ;;  %4566 = vmatprep.mubr.msk.f32.mxu0 %vm5690_vm4, %v6716_v52 }
 0x763   : > { %5263 = vmatprep.subr.bf16.mxu0 %v6717_v35 }
 0x766   : > { %5265 = vmatpush3.bf16.msra.mxu0 %v6047_v51 }
 0x767   : > { %5266 = vmatprep.subr.bf16.mxu0 %v6717_v35 }
 0x76a   : > { %5268 = vmatpush3.bf16.msra.mxu0 %v6060_v60 }
 0x76b   : > { %5269 = vmatprep.subr.bf16.mxu0 %v6717_v35 }
 0x76e   : > { %5271 = vmatpush3.bf16.msra.mxu0 %v6070_v6 }
 0x76f   : > { %5272 = vmatprep.subr.bf16.mxu0 %v6717_v35 }
 0x772   : > { %5274 = vmatpush3.bf16.msra.mxu0 %v6080_v19 }
 0x773   : > { %5275 = vmatprep.subr.bf16.mxu0 %v6717_v35 }
 0x776   : > { %5277 = vmatpush3.bf16.msra.mxu0 %v6090_v28 }
 0x777   : > { %5278 = vmatprep.subr.bf16.mxu0 %v6717_v35 }
 0x77a   : > { %5280 = vmatpush3.bf16.msra.mxu0 %v6100_v37 }
 0x77b   : > { %5281 = vmatprep.subr.bf16.mxu0 %v6717_v35 }
 0x77e   : > { %5283 = vmatpush3.bf16.msra.mxu0 %v6110_v46 }
 0x814   : > { %v3221_v44 = vpop.f32.mrb[34].mxu0  ;;  %v3292_v45 = vpop.f32.mrb[34].mxu1 }
 0x815   : > { %v3223_v9 = vpop.f32.mrb[35].mxu0  ;;  %v4498_v50 = vpop.f32.mrb[35].mxu1  ;;  %v3301_v21 = vadd.f32 %v3292_v45, %v3154_v11 }
 0x816   : > { %v3298_v51 = vcombine.low %v3221_v44, %v3223_v9 }
 0x817   : > { %v3303_v28 = vmul.f32 0.5, %v3301_v21 }
 0x818   : > { %v3300_v59 = vadd.f32 %v3298_v51, %v3153_v53 }
 0x81a   : > { %v3302_v60 = vmul.f32 0.5, %v3300_v59 }
 0x81c   : > { %5458 = vtanh.f32 %v3302_v60 }
 0x826   : > { %v5459_v62 = vpop.eup %5458 }
 0x827   : > { %v3306_v27 = vadd.f32 1.0, %v5459_v62 }
 0x829   : > { %v3308_v30 = vmul.f32 0.5, %v3306_v27 }
 0x82b   : > { %v3384_v36 = vrot.slane %v3308_v30, 4 }
 0x82d   : > { %v3386_v39 = vmul.f32 %v3384_v36, %v6566_v61 }
 0x834   : > { %v3377_v6 = vpop.f32.mrb[36].mxu0 }
 0x835   : > { %v3381_v18 = vadd.f32 %v3377_v6, %v3310_v5  ;;  %v4533_v19 = vpop.f32.mrb[37].mxu0 }
 0x837   : > { %5460 = vtanh.f32 %v3381_v18 }
 0x838   : > { %5462 = vtanh.f32 %v3303_v28 }
 0x841   : > { %v5461_v37 = vpop.eup %5460 }
 0x842   : > { %v3387_v4 = vmul.f32 %v5461_v37, %v3308_v30  ;;  %v5463_v14 = vpop.eup %5462 }
 0x843   : > { %v3307_v33 = vadd.f32 1.0, %v5463_v14 }
 0x844   : > { %v3388_v46 = vadd.f32 %v3387_v4, %v3386_v39 }
 0x845   : > { %v3309_v12 = vmul.f32 0.5, %v3307_v33 }
 0x846   : > { %5464 = vtanh.f32 %v3388_v46 }
 0x850   : > { %v5465_v42 = vpop.eup %5464 }
 0x851   : > { %v3390_v38 = vmul.f32 %v5465_v42, %v3309_v12 }
 0x853   : > { %3458 = vmatmul.mubr.f32.vlgmr.msra.gmra.mrb[36].mxu1 %v3390_v38  ;;  %4567 = vmatmul.mubr.f32.vlgmr.msra.gmra.mrb[38].mxu0 %v3390_v38 }
 0x854   : > { %5286 = vmatpush3.bf16.msra.mxu1 %v6116_v49  ;;  %4601 = vmatprep.mubr.msk.f32.mxu1 %vm5690_vm4, %v6716_v52 }
 0x855   : > { %5287 = vmatprep.subr.bf16.mxu1 %v6717_v35 }
 0x858   : > { %5289 = vmatpush3.bf16.msra.mxu1 %v6121_v55 }
 0x859   : > { %5290 = vmatprep.subr.bf16.mxu1 %v6717_v35 }
 0x85c   : > { %5292 = vmatpush3.bf16.msra.mxu1 %v6130_v58 }
 0x85d   : > { %5293 = vmatprep.subr.bf16.mxu1 %v6717_v35 }
 0x860   : > { %5295 = vmatpush3.bf16.msra.mxu1 %v6136_v0 }
 0x861   : > { %5296 = vmatprep.subr.bf16.mxu1 %v6717_v35 }
 0x864   : > { %5298 = vmatpush3.bf16.msra.mxu1 %v6142_v3 }
 0x865   : > { %5299 = vmatprep.subr.bf16.mxu1 %v6717_v35 }
 0x868   : > { %5301 = vmatpush3.bf16.msra.mxu1 %v6148_v13  ;;  %v3548_v13 = vld [vmem:[#allocation2 + $0x7c] sm:$0xf] }
 0x869   : > { %5302 = vmatprep.subr.bf16.mxu1 %v6717_v35 }
 0x86c   : > { %5304 = vmatpush3.bf16.msra.mxu1 %v6154_v17 }
 0x86d   : > { %5305 = vmatprep.subr.bf16.mxu1 %v6717_v35 }
 0x870   : > { %5307 = vmatpush3.bf16.msra.mxu1 %v6160_v23 }
 0x873   : > { %4602 = vmatmul.mubr.f32.vlgmr.msra.gmra.mrb[38].mxu1 %v3390_v38 }
 0x926   : > { %v3459_v49 = vpop.f32.mrb[36].mxu1  ;;  %v3530_v55 = vpop.f32.mrb[38].mxu0 }
 0x927   : > { %v3461_v58 = vpop.f32.mrb[37].mxu1  ;;  %v4568_v0 = vpop.f32.mrb[39].mxu0  ;;  %v3539_v24 = vadd.f32 %v3530_v55, %v3392_v22 }
 0x928   : > { %v3536_v52 = vcombine.low %v3459_v49, %v3461_v58 }
 0x929   : > { %v3541_v23 = vmul.f32 0.5, %v3539_v24 }
 0x92a   : > { %v3538_v3 = vadd.f32 %v3536_v52, %v3391_v63 }
 0x92c   : > { %v3540_v56 = vmul.f32 0.5, %v3538_v3 }
 0x92e   : > { %5466 = vtanh.f32 %v3540_v56 }
 0x938   : > { %v5467_v10 = vpop.eup %5466 }
 0x939   : > { %v3544_v35 = vadd.f32 1.0, %v5467_v10 }
 0x93b   : > { %v3546_v8 = vmul.f32 0.5, %v3544_v35 }
 0x93d   : > { %v3622_v34 = vrot.slane %v3546_v8, 4 }
 0x93f   : > { %v3624_v2 = vmul.f32 %v3622_v34, %v3388_v46 }
 0x946   : > { %v3615_v47 = vpop.f32.mrb[38].mxu1 }
 0x947   : > { %v3619_v1 = vadd.f32 %v3615_v47, %v3548_v13  ;;  %v4603_v17 = vpop.f32.mrb[39].mxu1 }
 0x949   : > { %5468 = vtanh.f32 %v3619_v1 }
 0x94a   : > { %5470 = vtanh.f32 %v3541_v23 }
 0x953   : > { %v5469_v57 = vpop.eup %5468 }
 0x954   : > { %v3625_v48 = vmul.f32 %v5469_v57, %v3546_v8  ;;  %v5471_v41 = vpop.eup %5470 }
 0x955   : > { %v3545_v40 = vadd.f32 1.0, %v5471_v41 }
 0x956   : > { %v3626_v7 = vadd.f32 %v3625_v48, %v3624_v2 }
 0x957   : > { %v3547_v32 = vmul.f32 0.5, %v3545_v40 }
 0x958   : > { %5472 = vtanh.f32 %v3626_v7  ;;  %3630 = vst [vmem:[#allocation4] sm:$0xf] %v3626_v7 }
 0x95f   : > { %3634 = sbr.rel (%p3767_p5) target bundleno = 2406 (0x966), region = 60 }
 0x962   : > { %v5473_v29 = vpop.eup %5472 }
 0x963   : > { %v3628_v26 = vmul.f32 %v5473_v29, %v3547_v32 }
 0x965   : > { %3629 = vst [vmem:[#allocation3] sm:$0xf] %v3628_v26  ;;  %3635 = vst [vmem:[#allocation13] sm:$0xf] (!%p3767_p5), %v3628_v26 }
 0x966 PF: > { %s6724_s22 = sadd.s32 4294967295, %s5676_s20   ;;  %s5691_s24 = smov [#allocation13]  }
 0x967   : > { %p6642_p6 = scmp.eq.s32.totalorder %s6724_s22, 1  ;;  %s3645_s28 = sshll.u32 %s5691_s24, 4  ;;  %s3646_s28 = int_to_ptr.vmem [resolvable:$true] %s3645_s28 }
 0x968   : > { %s5588_s4 = scalar_lea.vmem %s3646_s28, 64  ;;  %p5595_p10 = scmp.lt.s32.totalorder %s3646_s28, %s3646_s28 }
 0x969   : > { %p5589_p9 = scmp.ne.s32.totalorder %s3646_s28, %s5588_s4  ;;  %p5596_p3 = scmp.lt.s32.totalorder %s5588_s4, %s5588_s4 }
 0x96b   : > { %p5590_p11 = pnand %p5589_p9, %p6642_p6  ;;  %p5597_p12 = por %p5596_p3, %p5595_p10 }
 0x96d   : > { %p5591_p0 = pneg %p5590_p11 }
 0x96f   : > { %p5598_p1 = pnand %p5597_p12, %p5591_p0 }
 0x971   : > { %5601 = shalt.err (!%p5598_p1)
}
 0x972   : > { %s6726_s6 = sld [smem:[#allocation19_spill]] }
 0x978   : > { %s5602_s13 = scalar_lea.hbm %s6726_s6, 64 }
 0x979   : > { %p5603_p2 = scmp.ne.s32.totalorder %s6726_s6, %s5602_s13  ;;  %p5608_p4 = scmp.lt.u32.totalorder %s5602_s13, %s6726_s6 }
 0x97b   : > { %p5604_p8 = pnand %p5603_p2, %p6642_p6 }
 0x97d   : > { %p5605_p13 = pneg %p5604_p8 }
 0x97f   : > { %p5610_p7 = pnand %p5608_p4, %p5605_p13 }
 0x981   : > { %5613 = shalt.err (!%p5610_p7)
}
 0x982   : > { %5323 = dma.vmem_to_hbm [thread:$0]  (%p6642_p6), %s3646_s28, 64, %s6726_s6, [#allocation7]  }
 0x983   : > { %5651 = dma.done.wait (%p6642_p6), [#allocation7], 64  }
 0x984   : > { %5653 = vsyncadd (%p6642_p6), [#allocation7], 4294967232 }
 0x985 PF: > { %s20_s20 = sadd.s32 1, %s5676_s20   ;;  %s6727_s15 = smov %s5660_s16 }
 0x986   : > { %p17_p5 = scmp.ge.s32.totalorder %s20_s20, 4   ;;  %s6728_s16 = smov %s5664_s17 }
 0x987   : > { %s6729_s17 = smov %s5857_s30  ;;  %s6730_s18 = smov %s5672_s19 }
 0x988   : > { %s6731_s19 = smov %s6733_s29  ;;  %19 = sbr.rel (!%p17_p5) target bundleno = 9 (0x9), region = 101 }
 0x98f   :  { %3658 = vsyncpa [#allocation6], 1 }
 0x990   :  { %3660 = vsyncpa [#allocation6 + $0x1], 1 }
 0x991   :  { %3661 = vsyncpa [#allocation9], 1 }
 0x992   :  { %3662 = vsyncpa [#allocation12], 1 }
 0x993   :  { %3663 = vsyncpa [#allocation7], 1 }
 0x994   :  { %3665 = vsyncpa [#allocation7 + $0x1], 1 }

</bundles_post_ra>
